<compile_context>
chip_gen: v7x
topology: tpu7x:2x2x1
jax: 0.10.0
libtpu: 0.0.40
codegen_flags: <defaults>
</compile_context>

<pallas_src>
import functools
import math

import jax
import jax.numpy as jnp
from jax.experimental import pallas as pl
from jax.experimental.pallas import tpu as pltpu

LANE = 128


def _round_up(v, m):
    return ((v + m - 1) // m) * m


def _pad2(m, rows, cols, dtype):
    """Zero-pad a 2-D array to (rows, cols) and cast.  Fast paths avoid extra passes."""
    if m.shape == (rows, cols):
        return m if m.dtype == dtype else m.astype(dtype)
    out = jnp.zeros((rows, cols), dtype)
    return out.at[: m.shape[0], : m.shape[1]].set(m.astype(dtype))


# ---------------------------------------------------------------------------
# Fused kernel: one (row-block i, k-block) step of
#   out = relu(A_hat @ (x @ Wg^T) + b_gcn) + (x @ Wr^T + b_res)
#   - h_k = x_k @ Wg^T recomputed on the fly (no H in HBM)
#   - f32 output block is resident across k and doubles as the accumulator
#   - bias + ReLU + residual projection gated behind pl.when(k == last)
# ---------------------------------------------------------------------------
def _fused_kernel(a_ref, xk_ref, xi_ref, wg_ref, wr_ref, bg_ref, br_ref, o_ref):
    k = pl.program_id(1)

    @pl.when(k == 0)
    def _():
        o_ref[...] = jnp.zeros_like(o_ref)

    # h_k = x_k @ Wg^T  (bf16 x bf16 -> f32 on the MXU, re-quantized to bf16)
    h_k = jnp.dot(xk_ref[...], wg_ref[...],
                  preferred_element_type=jnp.float32).astype(jnp.bfloat16)
    # acc_i += A_hat[i, k] @ h_k  (f32 accumulate directly in the output block)
    o_ref[...] += jnp.dot(a_ref[...], h_k, preferred_element_type=jnp.float32)

    @pl.when(k == pl.num_programs(1) - 1)
    def _():
        gcn = jnp.maximum(o_ref[...] + bg_ref[...], 0.0)
        res = jnp.dot(xi_ref[...], wr_ref[...],
                      preferred_element_type=jnp.float32) + br_ref[...]
        o_ref[...] = (gcn + res).astype(o_ref.dtype)


@functools.partial(jax.jit, static_argnames=("tile_rows", "tile_k"))
def resblock_forward(x, a_hat, w_gcn, b_gcn, w_res, b_res, *,
                     tile_rows=None, tile_k=None):
    """ResBlock(ConvBlock('gcnconv', [Fin, Fout]), residual_type='add') forward.

    x     : (N, Fin) node features (any float dtype)
    a_hat : (N, N)   dense normalized adjacency D^-1/2 (A+I) D^-1/2.  Pass it already
                     in bf16 (and cache it across layers) to avoid any extra N^2 pass.
    w_gcn : (Fout, Fin), b_gcn: (Fout,)   GCNConv.lin weight / bias
    w_res : (Fout, Fin), b_res: (Fout,)   residual projection weight / bias
    returns (N, Fout) f32.  adj_t / pos / batch are pass-through (no kernel needed).
    """
    N, Fin = x.shape
    Fout = w_gcn.shape[0]
    Fpad = _round_up(Fout, LANE)                 # lane-dense output width

    # 512-class tiles: ~85%+ of HBM roofline, working set well under 32 MiB scoped VMEM
    # on every generation.  For N >= 1024 the default gives >= 2 row blocks, so the
    # "parallel" row axis splits across v7x's two TensorCores.
    if tile_rows is None:
        tile_rows = min(512, _round_up(N, LANE))
    if tile_k is None:
        tile_k = min(512, _round_up(N, LANE))

    Np = _round_up(N, math.lcm(tile_rows, tile_k))
    n_row_blocks = Np // tile_rows
    n_k_blocks = Np // tile_k

    # All pads / casts happen inside this jit (fast-path no-ops when a_hat is already
    # bf16 and N is tile-aligned), so there is no standalone N^2 cast pass.
    a_pad = _pad2(a_hat, Np, Np, jnp.bfloat16)
    x_pad = _pad2(x, Np, Fin, jnp.bfloat16)
    wg_pad = _pad2(w_gcn.T, Fin, Fpad, jnp.bfloat16)          # (Fin, Fpad)
    wr_pad = _pad2(w_res.T, Fin, Fpad, jnp.bfloat16)          # (Fin, Fpad)
    bg_pad = _pad2(b_gcn.reshape(1, Fout), 1, Fpad, jnp.float32)
    br_pad = _pad2(b_res.reshape(1, Fout), 1, Fpad, jnp.float32)

    cost = pl.CostEstimate(
        flops=2 * Np * Np * Fpad                       # aggregation
        + 2 * n_row_blocks * Np * Fin * Fpad           # h_k recompute per row block
        + 2 * Np * Fin * Fpad,                         # residual projection
        transcendentals=0,
        bytes_accessed=Np * Np * 2                     # bf16 A_hat
        + (n_row_blocks + 1) * Np * Fin * 2            # x k-stream + x row blocks
        + Np * Fpad * 4,                               # f32 output
    )

    out_pad = pl.pallas_call(
        _fused_kernel,
        out_shape=jax.ShapeDtypeStruct((Np, Fpad), jnp.float32),
        grid_spec=pltpu.PrefetchScalarGridSpec(
            num_scalar_prefetch=0,
            grid=(n_row_blocks, n_k_blocks),
            in_specs=[
                pl.BlockSpec((tile_rows, tile_k), lambda i, k: (i, k)),  # A_hat tile
                pl.BlockSpec((tile_k, Fin), lambda i, k: (k, 0)),        # x (K side)
                pl.BlockSpec((tile_rows, Fin), lambda i, k: (i, 0)),     # x (row side)
                pl.BlockSpec((Fin, Fpad), lambda i, k: (0, 0)),          # Wg^T (resident)
                pl.BlockSpec((Fin, Fpad), lambda i, k: (0, 0)),          # Wr^T (resident)
                pl.BlockSpec((1, Fpad), lambda i, k: (0, 0)),            # b_gcn
                pl.BlockSpec((1, Fpad), lambda i, k: (0, 0)),            # b_res
            ],
            out_specs=pl.BlockSpec((tile_rows, Fpad), lambda i, k: (i, 0)),
        ),
        compiler_params=pltpu.CompilerParams(
            dimension_semantics=("parallel", "arbitrary")),
        cost_estimate=cost,
    )(a_pad, x_pad, x_pad, wg_pad, wr_pad, bg_pad, br_pad)

    # Slice off the lane / row padding inside the jit so it fuses with consumers.
    return out_pad[:N, :Fout]


def normalize_adj(adj, out_dtype=jnp.float32):
    """GCN symmetric normalization with self loops: D^-1/2 (A+I) D^-1/2 (plain-JAX glue).

    Emit bf16 directly (out_dtype=jnp.bfloat16) and cache the result across layers to
    avoid any standalone N^2 cast pass before the kernel.
    """
    N = adj.shape[0]
    a = adj + jnp.eye(N, dtype=adj.dtype)
    deg = a.sum(axis=1)
    d_inv_sqrt = jnp.where(deg > 0, 1.0 / jnp.sqrt(deg), 0.0)
    return (d_inv_sqrt[:, None] * a * d_inv_sqrt[None, :]).astype(out_dtype)


if __name__ == "__main__":
    key = jax.random.PRNGKey(0)
    # 1024 nodes with 512x512 tiles -> 2x2 grid: exercises the k-reduction epilogue and
    # gives >= 2 row blocks for the "parallel" axis (v7x dual-TC).
    N, Fin, Fout = 1024, 32, 48   # Fin != Fout -> residual projection path

    k_x, k_e, k_wg, k_bg, k_wr, k_br = jax.random.split(key, 6)

    x = jax.random.normal(k_x, (N, Fin), dtype=jnp.float32)

    # random symmetric adjacency (dense stand-in for adj_t), self loops via normalization
    logits = jax.random.uniform(k_e, (N, N))
    adj = (logits < 0.08).astype(jnp.float32)
    adj = jnp.maximum(adj, adj.T)
    adj = adj * (1.0 - jnp.eye(N, dtype=jnp.float32))
    a_hat = normalize_adj(adj)                       # f32, for the reference math

    # deterministic synthetic parameters
    w_gcn = jax.random.normal(k_wg, (Fout, Fin), dtype=jnp.float32) * 0.1
    b_gcn = jax.random.normal(k_bg, (Fout,), dtype=jnp.float32) * 0.1
    w_res = jax.random.normal(k_wr, (Fout, Fin), dtype=jnp.float32) * 0.1
    b_res = jax.random.normal(k_br, (Fout,), dtype=jnp.float32) * 0.1

    # feed a pre-quantized bf16 A_hat (what a real multi-layer model would cache),
    # so the jitted wrapper's pad/cast is a no-op.
    out = resblock_forward(x, a_hat.astype(jnp.bfloat16),
                           w_gcn, b_gcn, w_res, b_res,
                           tile_rows=512, tile_k=512)
    out = jax.block_until_ready(out)
    assert out.shape == (N, Fout)

    # reference 1: same dtype policy as the kernel (bf16 operands, f32 accumulate) -> tight
    def mm_bf16(a, b):
        return jnp.dot(a.astype(jnp.bfloat16).astype(jnp.float32),
                       b.astype(jnp.bfloat16).astype(jnp.float32))

    h_pol = mm_bf16(x, w_gcn.T).astype(jnp.bfloat16).astype(jnp.float32)
    ref_pol = (jnp.maximum(mm_bf16(a_hat, h_pol) + b_gcn, 0.0)
               + (mm_bf16(x, w_res.T) + b_res))
    assert jnp.allclose(out, ref_pol, atol=1e-2, rtol=1e-2), \
        float(jnp.max(jnp.abs(out - ref_pol)))

    # reference 2: full-f32 math of the original module -> loose check (bf16 quant error)
    ref_f32 = (jnp.maximum(a_hat @ (x @ w_gcn.T) + b_gcn, 0.0)
               + (x @ w_res.T + b_res))
    assert jnp.allclose(out, ref_f32, atol=5e-2, rtol=5e-2), \
        float(jnp.max(jnp.abs(out - ref_f32)))

    # adj_t / pos / batch are pass-through in this configuration (no EGNN).
    print("KERNEL_OK")
</pallas_src>

<mosaic_0001>
module attributes {stable_mosaic.version = 11 : i64} {
  func.func @_fused_kernel(%arg0: i32, %arg1: i32, %arg2: memref<512x512xbf16, #tpu.memory_space<vmem>>, %arg3: memref<512x32xbf16, #tpu.memory_space<vmem>>, %arg4: memref<512x32xbf16, #tpu.memory_space<vmem>>, %arg5: memref<32x128xbf16, #tpu.memory_space<vmem>>, %arg6: memref<32x128xbf16, #tpu.memory_space<vmem>>, %arg7: memref<1x128xf32, #tpu.memory_space<vmem>>, %arg8: memref<1x128xf32, #tpu.memory_space<vmem>>, %arg9: memref<512x128xf32, #tpu.memory_space<vmem>>) attributes {dimension_semantics = [#tpu.dimension_semantics<parallel>, #tpu.dimension_semantics<arbitrary>], iteration_bounds = array<i64: 2, 2>, scalar_prefetch = 0 : i64, scratch_operands = 0 : i64, tpu.core_type = #tpu.core_type<tc>, window_params = [{transform_indices = @transform_0, window_bounds = array<i64: 512, 512>}, {transform_indices = @transform_1, window_bounds = array<i64: 512, 32>}, {transform_indices = @transform_2, window_bounds = array<i64: 512, 32>}, {pipeline_mode = #tpu.pipeline_mode<synchronous>, transform_indices = @transform_3, window_bounds = array<i64: 32, 128>}, {pipeline_mode = #tpu.pipeline_mode<synchronous>, transform_indices = @transform_4, window_bounds = array<i64: 32, 128>}, {pipeline_mode = #tpu.pipeline_mode<synchronous>, transform_indices = @transform_5, window_bounds = array<i64: 1, 128>}, {pipeline_mode = #tpu.pipeline_mode<synchronous>, transform_indices = @transform_6, window_bounds = array<i64: 1, 128>}, {transform_indices = @transform_7, window_bounds = array<i64: 512, 128>}]} {
    %c0_i32 = arith.constant 0 : i32
    %0 = arith.cmpi eq, %arg1, %c0_i32 : i32
    %1 = arith.extui %0 : i1 to i32
    %c0_i32_0 = arith.constant 0 : i32
    %2 = arith.cmpi ne, %1, %c0_i32_0 : i32
    scf.if %2 {
      %cst_12 = arith.constant 0.000000e+00 : f32
      %15 = vector.broadcast %cst_12 : f32 to vector<512x128xf32>
      %c0_13 = arith.constant 0 : index
      %c0_14 = arith.constant 0 : index
      %16 = vector.load %arg9[%c0_13, %c0_14] : memref<512x128xf32, #tpu.memory_space<vmem>>, vector<512x128xf32>
      tpu.vector_store %arg9[%c0_13, %c0_14], %15 {strides = array<i32>} : memref<512x128xf32, #tpu.memory_space<vmem>>, vector<512x128xf32>,
    } else {
    }
    %c0 = arith.constant 0 : index
    %c0_1 = arith.constant 0 : index
    %3 = vector.load %arg3[%c0, %c0_1] : memref<512x32xbf16, #tpu.memory_space<vmem>>, vector<512x32xbf16>
    %c0_2 = arith.constant 0 : index
    %c0_3 = arith.constant 0 : index
    %4 = vector.load %arg5[%c0_2, %c0_3] : memref<32x128xbf16, #tpu.memory_space<vmem>>, vector<32x128xbf16>
    %cst = arith.constant dense<0.000000e+00> : vector<512x128xf32>
    %5 = tpu.matmul %3, %4, %cst {dimension_numbers = #tpu.dot_dimension_numbers<[1], [0], [0], [1], [0, 0, 1, 1], [], []>} : vector<512x32xbf16>, vector<32x128xbf16>, vector<512x128xf32> -> vector<512x128xf32>
    %6 = arith.truncf %5 : vector<512x128xf32> to vector<512x128xbf16>
    %c0_4 = arith.constant 0 : index
    %c0_5 = arith.constant 0 : index
    %7 = vector.load %arg9[%c0_4, %c0_5] : memref<512x128xf32, #tpu.memory_space<vmem>>, vector<512x128xf32>
    %c0_6 = arith.constant 0 : index
    %c0_7 = arith.constant 0 : index
    %8 = vector.load %arg2[%c0_6, %c0_7] : memref<512x512xbf16, #tpu.memory_space<vmem>>, vector<512x512xbf16>
    %cst_8 = arith.constant dense<0.000000e+00> : vector<512x128xf32>
    %9 = tpu.matmul %8, %6, %cst_8 {dimension_numbers = #tpu.dot_dimension_numbers<[1], [0], [0], [1], [0, 0, 1, 1], [], []>} : vector<512x512xbf16>, vector<512x128xbf16>, vector<512x128xf32> -> vector<512x128xf32>
    %10 = arith.addf %7, %9 : vector<512x128xf32>
    %c0_9 = arith.constant 0 : index
    %c0_10 = arith.constant 0 : index
    %11 = vector.load %arg9[%c0_9, %c0_10] : memref<512x128xf32, #tpu.memory_space<vmem>>, vector<512x128xf32>
    tpu.vector_store %arg9[%c0_9, %c0_10], %10 {strides = array<i32>} : memref<512x128xf32, #tpu.memory_space<vmem>>, vector<512x128xf32>,
    %c1_i32 = arith.constant 1 : i32
    %12 = arith.cmpi eq, %arg1, %c1_i32 : i32
    %13 = arith.extui %12 : i1 to i32
    %c0_i32_11 = arith.constant 0 : i32
    %14 = arith.cmpi ne, %13, %c0_i32_11 : i32
    scf.if %14 {
      %c0_12 = arith.constant 0 : index
      %c0_13 = arith.constant 0 : index
      %15 = vector.load %arg9[%c0_12, %c0_13] : memref<512x128xf32, #tpu.memory_space<vmem>>, vector<512x128xf32>
      %c0_14 = arith.constant 0 : index
      %c0_15 = arith.constant 0 : index
      %16 = vector.load %arg7[%c0_14, %c0_15] : memref<1x128xf32, #tpu.memory_space<vmem>>, vector<1x128xf32>
      %17 = vector.broadcast %16 : vector<1x128xf32> to vector<512x128xf32>
      %18 = arith.addf %15, %17 : vector<512x128xf32>
      %cst_16 = arith.constant 0.000000e+00 : f32
      %19 = vector.broadcast %cst_16 : f32 to vector<512x128xf32>
      %20 = arith.maximumf %18, %19 : vector<512x128xf32>
      %c0_17 = arith.constant 0 : index
      %c0_18 = arith.constant 0 : index
      %21 = vector.load %arg4[%c0_17, %c0_18] : memref<512x32xbf16, #tpu.memory_space<vmem>>, vector<512x32xbf16>
      %c0_19 = arith.constant 0 : index
      %c0_20 = arith.constant 0 : index
      %22 = vector.load %arg6[%c0_19, %c0_20] : memref<32x128xbf16, #tpu.memory_space<vmem>>, vector<32x128xbf16>
      %cst_21 = arith.constant dense<0.000000e+00> : vector<512x128xf32>
      %23 = tpu.matmul %21, %22, %cst_21 {dimension_numbers = #tpu.dot_dimension_numbers<[1], [0], [0], [1], [0, 0, 1, 1], [], []>} : vector<512x32xbf16>, vector<32x128xbf16>, vector<512x128xf32> -> vector<512x128xf32>
      %c0_22 = arith.constant 0 : index
      %c0_23 = arith.constant 0 : index
      %24 = vector.load %arg8[%c0_22, %c0_23] : memref<1x128xf32, #tpu.memory_space<vmem>>, vector<1x128xf32>
      %25 = vector.broadcast %24 : vector<1x128xf32> to vector<512x128xf32>
      %26 = arith.addf %23, %25 : vector<512x128xf32>
      %27 = arith.addf %20, %26 : vector<512x128xf32>
      %c0_24 = arith.constant 0 : index
      %c0_25 = arith.constant 0 : index
      %28 = vector.load %arg9[%c0_24, %c0_25] : memref<512x128xf32, #tpu.memory_space<vmem>>, vector<512x128xf32>
      tpu.vector_store %arg9[%c0_24, %c0_25], %27 {strides = array<i32>} : memref<512x128xf32, #tpu.memory_space<vmem>>, vector<512x128xf32>,
    } else {
    }
    return
  }
  func.func @transform_0(%arg0: i32, %arg1: i32) -> (i32, i32) {
    %c0_i32 = arith.constant 0 : i32
    return %arg0, %arg1 : i32, i32
  }
  func.func @transform_1(%arg0: i32, %arg1: i32) -> (i32, i32) {
    %c0_i32 = arith.constant 0 : i32
    %c0_i32_0 = arith.constant 0 : i32
    return %arg1, %c0_i32 : i32, i32
  }
  func.func @transform_2(%arg0: i32, %arg1: i32) -> (i32, i32) {
    %c0_i32 = arith.constant 0 : i32
    %c0_i32_0 = arith.constant 0 : i32
    return %arg0, %c0_i32 : i32, i32
  }
  func.func @transform_3(%arg0: i32, %arg1: i32) -> (i32, i32) {
    %c0_i32 = arith.constant 0 : i32
    %c0_i32_0 = arith.constant 0 : i32
    %c0_i32_1 = arith.constant 0 : i32
    return %c0_i32, %c0_i32_0 : i32, i32
  }
  func.func @transform_4(%arg0: i32, %arg1: i32) -> (i32, i32) {
    %c0_i32 = arith.constant 0 : i32
    %c0_i32_0 = arith.constant 0 : i32
    %c0_i32_1 = arith.constant 0 : i32
    return %c0_i32, %c0_i32_0 : i32, i32
  }
  func.func @transform_5(%arg0: i32, %arg1: i32) -> (i32, i32) {
    %c0_i32 = arith.constant 0 : i32
    %c0_i32_0 = arith.constant 0 : i32
    %c0_i32_1 = arith.constant 0 : i32
    return %c0_i32, %c0_i32_0 : i32, i32
  }
  func.func @transform_6(%arg0: i32, %arg1: i32) -> (i32, i32) {
    %c0_i32 = arith.constant 0 : i32
    %c0_i32_0 = arith.constant 0 : i32
    %c0_i32_1 = arith.constant 0 : i32
    return %c0_i32, %c0_i32_0 : i32, i32
  }
  func.func @transform_7(%arg0: i32, %arg1: i32) -> (i32, i32) {
    %c0_i32 = arith.constant 0 : i32
    %c0_i32_0 = arith.constant 0 : i32
    return %arg0, %c0_i32 : i32, i32
  }
}

</mosaic_0001>

<bundles_post_ra>
// kernel: resblock_forward.1
= control target key start
LH: loop header
LB: loop body
LE: loop exit
PB: predicated region body
PF: predicated region fallthrough
CT: control target
= control target key end

     0   :  { %s5804_s0 = inlined_call_operand.hbm [shape: bf16[1024,1024], index: 0, kind: input, shape index: {}]   ;;  %s5805_s1 = inlined_call_operand.vmem [shape: bf16[1024,32], index: 1, kind: input, shape index: {}, may-alias: {1,2}]   ;;  %s5806_s2 = inlined_call_operand.vmem [shape: bf16[1024,32], index: 2, kind: input, shape index: {}, may-alias: {1,2}]   ;;  %s5807_s3 = inlined_call_operand.vmem [shape: bf16[32,128], index: 3, kind: input, shape index: {}]   ;;  %s5808_s4 = inlined_call_operand.vmem [shape: bf16[32,128], index: 4, kind: input, shape index: {}]   ;;  %s5809_s5 = inlined_call_operand.vmem [shape: f32[1,128], index: 5, kind: input, shape index: {}]   ;;  %s5810_s6 = inlined_call_operand.vmem [shape: f32[1,128], index: 6, kind: input, shape index: {}]   ;;  %s5811_s7 = inlined_call_operand.vmem [shape: f32[1024,128], index: 7, kind: output, shape index: {}]  }
   0x1   :  { %5814 = sst [smem:[#allocation6_spill]] %s5808_s4 }
   0x2   :  { %5815 = sst [smem:[#allocation7_spill]] %s5809_s5 }
   0x3   :  { %5816 = sst [smem:[#allocation8_spill]] %s5810_s6 }
   0x4   :  { %12 = vsyncpa [#allocation3], 0 }
   0x5   :  { %14 = vsyncpa [#allocation3 + $0x1], 0  ;;  %s4673_s24 = smov 0   ;;  %s4675_s25 = smov 0  }
   0x6   :  { %s4677_s26 = smov 0   ;;  %s4679_s27 = smov 0  }
   0x7   :  { %s4681_s28 = smov 0   ;;  %s4683_s29 = smov 0  }
   0x8   :  { %s4685_s30 = smov 0   ;;  %s4687_s8 = smov 0  }
   0x9 LB: > { %s3697_s9 = sadd.s32 4294967295, %s4625_s8   ;;  %s29_s10 = sadd.s32 1, %s4617_s29  ;;  %s4625_s8 = sphi %s4687_s8, %s20_s8   ;;  %s4621_s30 = sphi %s4685_s30, %s5831_s30   ;;  %s4617_s29 = sphi %s4683_s29, %s5830_s29   ;;  %s4613_s28 = sphi %s4681_s28, %s5829_s28   ;;  %s4609_s27 = sphi %s4679_s27, %s5828_s27   ;;  %s4605_s26 = sphi %s4677_s26, %s5827_s26   ;;  %s4601_s25 = sphi %s4675_s25, %s5826_s25   ;;  %s4597_s24 = sphi %s4673_s24, %s5825_s24  }
   0xa   : > { %p30_p0 = scmp.ge.s32.totalorder %s29_s10, 2  ;;  %s32_s11 = sadd.s32 1, %s4621_s30 }
   0xb   : > { %s41_s12 = sadd.s32 1, %s4605_s26  ;;  %p48_p1 = scmp.ne.s32.totalorder %s4605_s26, %s4601_s25 }
   0xc   : > { %s5833_s10 = smov (%p30_p0, %s29_s10), 0  ;;  %s5835_s11 = smov (!%p30_p0, %s32_s11), %s4621_s30 }
   0xd   : > { %5817 = sst [smem:[#allocation5_spill]] %s5833_s10  ;;  %s37_s13 = ssub.s32 %s4617_s29, %s5833_s10 }
   0xe   : > { %p49_p2 = scmp.eq.s32.totalorder %s4625_s8, 0  ;;  %p34_p3 = scmp.ge.s32.totalorder %s5835_s11, 2 }
   0xf   : > { %p54_p4 = scmp.ne.s32.totalorder %s4601_s25, %s4597_s24  ;;  %p55_p6 = scmp.eq.s32.totalorder %s3697_s9, 0 }
  0x10   : > { %p4724_p5 = por %p49_p2, %p48_p1  ;;  %s5837_s11 = smov (%p34_p3, %s5835_s11), 0 }
  0x11   : > { %p4730_p7 = por %p55_p6, %p54_p4  ;;  %s36_s16 = ssub.s32 %s4621_s30, %s5837_s11 }
  0x12   : > { %p4199_p8 = scmp.lt.s32.totalorder %s4625_s8, 4  ;;  %s38_s17 = sor.u32 %s37_s13, %s36_s16 }
  0x13   : > { %s252_s18 = sand.u32 1, %s4605_s26   ;;  %p39_p9 = scmp.eq.s32.totalorder %s38_s17, 0 }
  0x14   : > { %s3701_s19 = sshll.u32 %s252_s18, 10  ;;  %s3703_s20 = sshll.u32 %s4617_s29, 2 }
  0x15   : > { %s4740_s21 = scalar_select %p39_p9, %s4605_s26, %s41_s12  }
  0x16   : > { %s3980_s22 = sshll.u32 %s4621_s30, 9  ;;  %s256_s24 = scalar_lea.vmem [#allocation2], %s3701_s19 }
  0x17   : > { %s263_s23 = sadd.s32 %s3980_s22, %s3703_s20  ;;  %s266_s9 = sshll.u32 %s256_s24, 4  ;;  %s4743_s9 = int_to_ptr.vmem [resolvable:$true] %s266_s9 }
  0x18   : > { %s3705_s10 = sshll.u32 %s263_s23, 6  ;;  %p4754_p10 = pnand %p4199_p8, %p4724_p5 }
  0x19   : > { %s4748_s4 = scalar_lea.hbm %s5804_s0, %s3705_s10  ;;  %s4758_s13 = scalar_lea.sflag [#allocation3], %s252_s18 }
  0x1a   : > { %s4529_s16 = scalar_lea.hbm %s4748_s4, 16384  ;;  %p4531_p12 = pneg %p4754_p10 }
  0x1b   : > { %p4530_p11 = scmp.ne.s32.totalorder %s4748_s4, %s4529_s16  ;;  %s4534_s10 = scalar_lea.hbm %s5804_s0, 65536 }
  0x1c   : > { %p4535_p1 = scmp.lt.u32.totalorder %s4748_s4, %s5804_s0  ;;  %p4536_p2 = scmp.lt.u32.totalorder %s4534_s10, %s4529_s16 }
  0x1d   : > { %p4532_p13 = pnand %p4531_p12, %p4530_p11  ;;  %p4538_p4 = scmp.lt.u32.totalorder %s4529_s16, %s4748_s4 }
  0x1e   : > { %p4537_p3 = por %p4536_p2, %p4535_p1 }
  0x1f   : > { %p4533_p0 = pneg %p4532_p13 }
  0x20   : > { %p4539_p5 = por %p4538_p4, %p4537_p3 }
  0x22   : > { %p4540_p6 = pnand %p4539_p5, %p4533_p0 }
  0x24   : > { %4543 = shalt.err (!%p4540_p6)
}
  0x25   : > { %s4544_s18 = scalar_lea.vmem %s4743_s9, 16384  ;;  %s4627_s19 = smov [#allocation2]  }
  0x26   : > { %p4545_p8 = scmp.ne.s32.totalorder %s4743_s9, %s4544_s18  ;;  %s4549_s20 = sshll.u32 %s4627_s19, 4  ;;  %s4550_s20 = int_to_ptr.vmem [resolvable:$false] %s4549_s20 }
  0x27   : > { %s4551_s22 = scalar_lea.vmem %s4550_s20, 32768  ;;  %p4552_p13 = scmp.lt.s32.totalorder %s4743_s9, %s4550_s20 }
  0x28   : > { %p4547_p9 = pnand %p4545_p8, %p4531_p12  ;;  %p4553_p1 = scmp.lt.s32.totalorder %s4551_s22, %s4544_s18 }
  0x2a   : > { %p4548_p11 = pneg %p4547_p9  ;;  %p4554_p2 = por %p4553_p1, %p4552_p13 }
  0x2c   : > { %p4555_p3 = pnand %p4554_p2, %p4548_p11 }
  0x2e   : > { %4558 = shalt.err (!%p4555_p3)
}
  0x2f   : > { %s4628_s23 = smov 512   ;;  %s4629_s24 = smov 256  }
  0x30   : > { %s4630_s16 = smov 16   ;;  %p3706_p12 = scmp.ge.s32.totalorder %s4625_s8, 1 }
  0x31   : > { %4198 = dma.hbm_to_vmem [thread:$0]  (!%p4754_p10), %s4748_s4, 16384, %s4743_s9, %s4758_s13, %s4628_s23, %s4629_s24, %s4630_s16  }
  0x32   : > { %p292_p0 = scmp.lt.s32.totalorder %s4625_s8, 5 }
  0x34   : > { %p293_p4 = pnand %p3706_p12, %p292_p0 }
  0x35   : > { %s298_s5 = sand.u32 (!%p293_p4), 1, %s4601_s25  }
  0x36   : > { %296 = sbr.rel (%p293_p4) target bundleno = 1106 (0x452), region = 48  ;;  %s3707_s6 = sshll.u32 (!%p293_p4), %s298_s5, 10 }
  0x37   : > { %s299_s10 = scalar_lea.sflag (!%p293_p4), [#allocation3], %s298_s5  ;;  %s4789_s14 = scalar_lea.vmem (!%p293_p4), [#allocation2], %s3707_s6 }
  0x3d   : > { %4592 = dma.done.wait (%p4730_p7), %s299_s10, 16384  }
  0x3e   : > { %4594 = vsyncadd (%p4730_p7), %s299_s10, 4294950912  ;;  %s3708_s12 = sshll.u32 %s4609_s27, 6  ;;  %s3710_s4 = sshll.u32 %s4613_s28, 6 }
  0x3f   : > { %p346_p10 = scmp.lt.s32.totalorder %s3708_s12, 127  ;;  %p352_p5 = scmp.lt.s32.totalorder %s3710_s4, 127 }
  0x40   : > { %p3714_p7 = scmp.ne.s32.totalorder %s4609_s27, 0 }
  0x41   : > { %s5839_s12 = smov (!%p346_p10, %s3708_s12), 127  ;;  %s5841_s4 = smov (!%p352_p5, %s3710_s4), 127 }
  0x42   : > { %s3709_s9 = sshll.u32 %s5839_s12, 2  ;;  %s3711_s19 = sshll.u32 %s5841_s4, 2  ;;  %v4631_v0 = vmov (!%p3714_p7), 0.0  }
  0x43   : > { %s4800_s18 = scalar_lea.vmem %s5805_s1, %s3709_s9  ;;  %s4805_s15 = scalar_lea.vmem %s5806_s2, %s3711_s19 }
  0x44   : > { %s3713_s23 = sshll.u32 %s5841_s4, 3  ;;  %367 = sbr.rel (%p3714_p7) target bundleno = 102 (0x66), region = 56 }
  0x45   : > { %s4810_s28 = scalar_lea.vmem %s5811_s7, %s3713_s23 }
  0x46   : > { %368 = vst [vmem:[%s4810_s28] sm:$0xff] (!%p3714_p7), %v4631_v0  ;;  %369 = vst [vmem:[%s4810_s28 + $0x8] sm:$0xff] (!%p3714_p7), %v4631_v0 }
  0x47   : > { %370 = vst [vmem:[%s4810_s28 + $0x10] sm:$0xff] (!%p3714_p7), %v4631_v0  ;;  %371 = vst [vmem:[%s4810_s28 + $0x18] sm:$0xff] (!%p3714_p7), %v4631_v0 }
  0x48   : > { %372 = vst [vmem:[%s4810_s28 + $0x20] sm:$0xff] (!%p3714_p7), %v4631_v0  ;;  %373 = vst [vmem:[%s4810_s28 + $0x28] sm:$0xff] (!%p3714_p7), %v4631_v0 }
  0x49   : > { %374 = vst [vmem:[%s4810_s28 + $0x30] sm:$0xff] (!%p3714_p7), %v4631_v0  ;;  %375 = vst [vmem:[%s4810_s28 + $0x38] sm:$0xff] (!%p3714_p7), %v4631_v0 }
  0x4a   : > { %376 = vst [vmem:[%s4810_s28 + $0x40] sm:$0xff] (!%p3714_p7), %v4631_v0  ;;  %377 = vst [vmem:[%s4810_s28 + $0x48] sm:$0xff] (!%p3714_p7), %v4631_v0 }
  0x4b   : > { %378 = vst [vmem:[%s4810_s28 + $0x50] sm:$0xff] %v4631_v0  ;;  %379 = vst [vmem:[%s4810_s28 + $0x58] sm:$0xff] %v4631_v0 }
  0x4c   : > { %380 = vst [vmem:[%s4810_s28 + $0x60] sm:$0xff] %v4631_v0  ;;  %381 = vst [vmem:[%s4810_s28 + $0x68] sm:$0xff] %v4631_v0 }
  0x4d   : > { %382 = vst [vmem:[%s4810_s28 + $0x70] sm:$0xff] %v4631_v0  ;;  %383 = vst [vmem:[%s4810_s28 + $0x78] sm:$0xff] %v4631_v0 }
  0x4e   : > { %384 = vst [vmem:[%s4810_s28 + $0x80] sm:$0xff] %v4631_v0  ;;  %385 = vst [vmem:[%s4810_s28 + $0x88] sm:$0xff] %v4631_v0 }
  0x4f   : > { %386 = vst [vmem:[%s4810_s28 + $0x90] sm:$0xff] %v4631_v0  ;;  %387 = vst [vmem:[%s4810_s28 + $0x98] sm:$0xff] %v4631_v0 }
  0x50   : > { %388 = vst [vmem:[%s4810_s28 + $0xa0] sm:$0xff] %v4631_v0  ;;  %389 = vst [vmem:[%s4810_s28 + $0xa8] sm:$0xff] %v4631_v0 }
  0x51   : > { %390 = vst [vmem:[%s4810_s28 + $0xb0] sm:$0xff] %v4631_v0  ;;  %391 = vst [vmem:[%s4810_s28 + $0xb8] sm:$0xff] %v4631_v0 }
  0x52   : > { %392 = vst [vmem:[%s4810_s28 + $0xc0] sm:$0xff] %v4631_v0  ;;  %393 = vst [vmem:[%s4810_s28 + $0xc8] sm:$0xff] %v4631_v0 }
  0x53   : > { %394 = vst [vmem:[%s4810_s28 + $0xd0] sm:$0xff] %v4631_v0  ;;  %395 = vst [vmem:[%s4810_s28 + $0xd8] sm:$0xff] %v4631_v0 }
  0x54   : > { %396 = vst [vmem:[%s4810_s28 + $0xe0] sm:$0xff] %v4631_v0  ;;  %397 = vst [vmem:[%s4810_s28 + $0xe8] sm:$0xff] %v4631_v0 }
  0x55   : > { %398 = vst [vmem:[%s4810_s28 + $0xf0] sm:$0xff] %v4631_v0  ;;  %399 = vst [vmem:[%s4810_s28 + $0xf8] sm:$0xff] %v4631_v0 }
  0x56   : > { %400 = vst [vmem:[%s4810_s28 + $0x100] sm:$0xff] %v4631_v0  ;;  %401 = vst [vmem:[%s4810_s28 + $0x108] sm:$0xff] %v4631_v0 }
  0x57   : > { %402 = vst [vmem:[%s4810_s28 + $0x110] sm:$0xff] %v4631_v0  ;;  %403 = vst [vmem:[%s4810_s28 + $0x118] sm:$0xff] %v4631_v0 }
  0x58   : > { %404 = vst [vmem:[%s4810_s28 + $0x120] sm:$0xff] %v4631_v0  ;;  %405 = vst [vmem:[%s4810_s28 + $0x128] sm:$0xff] %v4631_v0 }
  0x59   : > { %406 = vst [vmem:[%s4810_s28 + $0x130] sm:$0xff] %v4631_v0  ;;  %407 = vst [vmem:[%s4810_s28 + $0x138] sm:$0xff] %v4631_v0 }
  0x5a   : > { %408 = vst [vmem:[%s4810_s28 + $0x140] sm:$0xff] %v4631_v0  ;;  %409 = vst [vmem:[%s4810_s28 + $0x148] sm:$0xff] %v4631_v0 }
  0x5b   : > { %410 = vst [vmem:[%s4810_s28 + $0x150] sm:$0xff] %v4631_v0  ;;  %411 = vst [vmem:[%s4810_s28 + $0x158] sm:$0xff] %v4631_v0 }
  0x5c   : > { %412 = vst [vmem:[%s4810_s28 + $0x160] sm:$0xff] %v4631_v0  ;;  %413 = vst [vmem:[%s4810_s28 + $0x168] sm:$0xff] %v4631_v0 }
  0x5d   : > { %414 = vst [vmem:[%s4810_s28 + $0x170] sm:$0xff] %v4631_v0  ;;  %415 = vst [vmem:[%s4810_s28 + $0x178] sm:$0xff] %v4631_v0 }
  0x5e   : > { %416 = vst [vmem:[%s4810_s28 + $0x180] sm:$0xff] %v4631_v0  ;;  %417 = vst [vmem:[%s4810_s28 + $0x188] sm:$0xff] %v4631_v0 }
  0x5f   : > { %418 = vst [vmem:[%s4810_s28 + $0x190] sm:$0xff] %v4631_v0  ;;  %419 = vst [vmem:[%s4810_s28 + $0x198] sm:$0xff] %v4631_v0 }
  0x60   : > { %420 = vst [vmem:[%s4810_s28 + $0x1a0] sm:$0xff] %v4631_v0  ;;  %421 = vst [vmem:[%s4810_s28 + $0x1a8] sm:$0xff] %v4631_v0 }
  0x61   : > { %422 = vst [vmem:[%s4810_s28 + $0x1b0] sm:$0xff] %v4631_v0  ;;  %423 = vst [vmem:[%s4810_s28 + $0x1b8] sm:$0xff] %v4631_v0 }
  0x62   : > { %424 = vst [vmem:[%s4810_s28 + $0x1c0] sm:$0xff] %v4631_v0  ;;  %425 = vst [vmem:[%s4810_s28 + $0x1c8] sm:$0xff] %v4631_v0 }
  0x63   : > { %426 = vst [vmem:[%s4810_s28 + $0x1d0] sm:$0xff] %v4631_v0  ;;  %427 = vst [vmem:[%s4810_s28 + $0x1d8] sm:$0xff] %v4631_v0 }
  0x64   : > { %428 = vst [vmem:[%s4810_s28 + $0x1e0] sm:$0xff] %v4631_v0  ;;  %429 = vst [vmem:[%s4810_s28 + $0x1e8] sm:$0xff] %v4631_v0 }
  0x65   : > { %430 = vst [vmem:[%s4810_s28 + $0x1f0] sm:$0xff] %v4631_v0  ;;  %431 = vst [vmem:[%s4810_s28 + $0x1f8] sm:$0xff] %v4631_v0 }
  0x66 PF: > { %v4269_v1 = vld [vmem:[%s5807_s3] sm:$0xff]   ;;  %v4270_v2 = vld [vmem:[%s5807_s3 + $0x8] sm:$0xff]   ;;  %vm672_vm0 = vcmask 261120   ;;  %v4275_v7 = vld [vmem:[%s4800_s18 + $0x10] sm:$0xff]   ;;  %v4632_v35 = vmov 0   ;;  %p3909_p6 = scmp.ne.s32.totalorder %s4609_s27, 1 }
  0x67   : > { %4049 = vmatprep.subr.bf16.mxu0 %v4269_v1  ;;  %4185 = vmatprep.subr.bf16.mxu1 %v4269_v1  ;;  %v4271_v3 = vld [vmem:[%s4800_s18] sm:$0xff]   ;;  %v4273_v5 = vld [vmem:[%s4800_s18 + $0x8] sm:$0xff]   ;;  %v4276_v8 = vld [vmem:[%s4800_s18 + $0x90] sm:$0xff]   ;;  %s5821_s9 = sld [smem:[#allocation6_spill]] (!%p3909_p6)  ;;  %s5822_s19 = sld [smem:[#allocation7_spill]] (!%p3909_p6) }
  0x68   : > { %4050 = vmatpush3.bf16.msra.mxu0 %v4269_v1  ;;  %4187 = vmatpush3.bf16.msra.mxu1 %v4269_v1  ;;  %v4272_v4 = vld [vmem:[%s4800_s18 + $0x80] sm:$0xff]   ;;  %v4274_v6 = vld [vmem:[%s4800_s18 + $0x88] sm:$0xff]   ;;  %v4277_v9 = vld [vmem:[%s4800_s18 + $0x18] sm:$0xff]  }
  0x69   : > { %4051 = vmatprep.subr.bf16.mxu0 %v4270_v2  ;;  %4186 = vmatprep.subr.bf16.mxu1 %v4270_v2  ;;  %v4278_v10 = vld [vmem:[%s4800_s18 + $0x98] sm:$0xff]   ;;  %v4279_v11 = vld [vmem:[%s4800_s18 + $0x20] sm:$0xff]   ;;  %v4281_v13 = vld [vmem:[%s4800_s18 + $0x28] sm:$0xff]  }
  0x6a   : > { %4053 = vmatprep.mubr.msk.bf16.mxu0 %vm672_vm0, %v4271_v3  ;;  %4085 = vmatprep.mubr.msk.bf16.mxu1 %vm672_vm0, %v4272_v4  ;;  %v4280_v12 = vld [vmem:[%s4800_s18 + $0xa0] sm:$0xff]   ;;  %v4282_v14 = vld [vmem:[%s4800_s18 + $0xa8] sm:$0xff]   ;;  %v4283_v15 = vld [vmem:[%s4800_s18 + $0x30] sm:$0xff]  }
  0x6b   : > { %v4284_v16 = vld [vmem:[%s4800_s18 + $0xb0] sm:$0xff]   ;;  %v4285_v17 = vld [vmem:[%s4800_s18 + $0x38] sm:$0xff]   ;;  %v4287_v19 = vld [vmem:[%s4800_s18 + $0x40] sm:$0xff]  }
  0x6c   : > { %4052 = vmatpush3.bf16.msra.mxu0 %v4270_v2  ;;  %4188 = vmatpush3.bf16.msra.mxu1 %v4270_v2  ;;  %v4286_v18 = vld [vmem:[%s4800_s18 + $0xb8] sm:$0xff]   ;;  %v4288_v20 = vld [vmem:[%s4800_s18 + $0xc0] sm:$0xff]   ;;  %v4289_v21 = vld [vmem:[%s4800_s18 + $0x48] sm:$0xff]  }
  0x6d   : > { %v4290_v22 = vld [vmem:[%s4800_s18 + $0xc8] sm:$0xff]   ;;  %v4291_v23 = vld [vmem:[%s4800_s18 + $0x50] sm:$0xff]   ;;  %v4293_v25 = vld [vmem:[%s4800_s18 + $0x58] sm:$0xff]   ;;  %1922 = vmatprep.subr.bf16.mxu1 %v4632_v35  ;;  %2211 = vmatprep.subr.bf16.mxu0 %v4632_v35 }
  0x6e   : > { %v4292_v24 = vld [vmem:[%s4800_s18 + $0xd0] sm:$0xff]   ;;  %v4294_v26 = vld [vmem:[%s4800_s18 + $0xd8] sm:$0xff]   ;;  %v4295_v27 = vld [vmem:[%s4800_s18 + $0x60] sm:$0xff]  }
  0x6f   : > { %4054 = vmatmul.mubr.msk.bf16.vlgmr.msra.gmra.mrb[0].mxu0 %vm672_vm0, %v4273_v5  ;;  %4086 = vmatmul.mubr.msk.bf16.vlgmr.msra.gmra.mrb[0].mxu1 %vm672_vm0, %v4274_v6  ;;  %v4296_v28 = vld [vmem:[%s4800_s18 + $0xe0] sm:$0xff]   ;;  %v4297_v29 = vld [vmem:[%s4800_s18 + $0x68] sm:$0xff]   ;;  %v4299_v31 = vld [vmem:[%s4800_s18 + $0x70] sm:$0xff]  }
  0x70   : > { %4057 = vmatprep.mubr.msk.bf16.mxu0 %vm672_vm0, %v4275_v7  ;;  %4089 = vmatprep.mubr.msk.bf16.mxu1 %vm672_vm0, %v4276_v8  ;;  %v4298_v30 = vld [vmem:[%s4800_s18 + $0xe8] sm:$0xff]   ;;  %v4300_v32 = vld [vmem:[%s4800_s18 + $0xf0] sm:$0xff]   ;;  %v4301_v33 = vld [vmem:[%s4800_s18 + $0x78] sm:$0xff]  }
  0x71   : > { %v4302_v34 = vld [vmem:[%s4800_s18 + $0xf8] sm:$0xff]   ;;  %v4305_v36 = vld [vmem:[%s4789_s14 + $0x4] ss:$16 sps:$4 sm:$0xff]  }
  0x72   : > { %v4308_v37 = vld [vmem:[%s4789_s14 + $0xc] ss:$16 sps:$4 sm:$0xff]  }
  0x77   : > { %4058 = vmatmul.mubr.msk.bf16.gmra.mrb[4].mxu0 %vm672_vm0, %v4277_v9  ;;  %4090 = vmatmul.mubr.msk.bf16.gmra.mrb[4].mxu1 %vm672_vm0, %v4278_v10 }
  0x78   : > { %4061 = vmatprep.mubr.msk.bf16.mxu0 %vm672_vm0, %v4279_v11  ;;  %4093 = vmatprep.mubr.msk.bf16.mxu1 %vm672_vm0, %v4280_v12 }
  0x7f   : > { %4062 = vmatmul.mubr.msk.bf16.gmra.mrb[8].mxu0 %vm672_vm0, %v4281_v13  ;;  %4094 = vmatmul.mubr.msk.bf16.gmra.mrb[8].mxu1 %vm672_vm0, %v4282_v14 }
  0x80   : > { %4065 = vmatprep.mubr.msk.bf16.mxu0 %vm672_vm0, %v4283_v15  ;;  %4097 = vmatprep.mubr.msk.bf16.mxu1 %vm672_vm0, %v4284_v16 }
  0x87   : > { %4066 = vmatmul.mubr.msk.bf16.gmra.mrb[12].mxu0 %vm672_vm0, %v4285_v17  ;;  %4098 = vmatmul.mubr.msk.bf16.gmra.mrb[12].mxu1 %vm672_vm0, %v4286_v18 }
  0x88   : > { %4069 = vmatprep.mubr.msk.bf16.mxu0 %vm672_vm0, %v4287_v19  ;;  %4101 = vmatprep.mubr.msk.bf16.mxu1 %vm672_vm0, %v4288_v20 }
  0x8f   : > { %4070 = vmatmul.mubr.msk.bf16.gmra.mrb[16].mxu0 %vm672_vm0, %v4289_v21  ;;  %4102 = vmatmul.mubr.msk.bf16.gmra.mrb[16].mxu1 %vm672_vm0, %v4290_v22 }
  0x90   : > { %4073 = vmatprep.mubr.msk.bf16.mxu0 %vm672_vm0, %v4291_v23  ;;  %4105 = vmatprep.mubr.msk.bf16.mxu1 %vm672_vm0, %v4292_v24 }
  0x97   : > { %4074 = vmatmul.mubr.msk.bf16.gmra.mrb[20].mxu0 %vm672_vm0, %v4293_v25  ;;  %4106 = vmatmul.mubr.msk.bf16.gmra.mrb[20].mxu1 %vm672_vm0, %v4294_v26 }
  0x98   : > { %4077 = vmatprep.mubr.msk.bf16.mxu0 %vm672_vm0, %v4295_v27  ;;  %4109 = vmatprep.mubr.msk.bf16.mxu1 %vm672_vm0, %v4296_v28 }
  0x9f   : > { %4078 = vmatmul.mubr.msk.bf16.gmra.mrb[24].mxu0 %vm672_vm0, %v4297_v29  ;;  %4110 = vmatmul.mubr.msk.bf16.gmra.mrb[24].mxu1 %vm672_vm0, %v4298_v30 }
  0xa0   : > { %4081 = vmatprep.mubr.msk.bf16.mxu0 %vm672_vm0, %v4299_v31  ;;  %4113 = vmatprep.mubr.msk.bf16.mxu1 %vm672_vm0, %v4300_v32 }
  0xa7   : > { %4082 = vmatmul.mubr.msk.bf16.gmra.mrb[28].mxu0 %vm672_vm0, %v4301_v33  ;;  %4114 = vmatmul.mubr.msk.bf16.gmra.mrb[28].mxu1 %vm672_vm0, %v4302_v34 }
  0xa8   : > { %1954 = vmatprep.mubr.bf16.mxu1 %v4305_v36  ;;  %2243 = vmatprep.mubr.bf16.mxu0 %v4308_v37 }
 0x142   : > { %v4055_v38 = vpop.f32.mrb[0].mxu0  ;;  %v4087_v39 = vpop.f32.mrb[0].mxu1 }
 0x143   : > { %v803_v40 = vpop.f32.mrb[1].mxu0  ;;  %v931_v41 = vpop.f32.mrb[1].mxu1 }
 0x144   : > { %v4056_v42 = vpop.f32.mrb[2].mxu0  ;;  %v4088_v43 = vpop.f32.mrb[2].mxu1 }
 0x145   : > { %v1059_v44 = vpack.c.bf16 %v4056_v42, %v4055_v38  ;;  %v1075_v45 = vpack.c.bf16 %v4088_v43, %v4087_v39  ;;  %v806_v46 = vpop.f32.mrb[3].mxu0  ;;  %v934_v47 = vpop.f32.mrb[3].mxu1 }
 0x146   : > { %v1058_v48 = vpack.c.bf16 %v806_v46, %v803_v40  ;;  %v1074_v49 = vpack.c.bf16 %v934_v47, %v931_v41 }
 0x148   : > { %1923 = vmatpush1.bf16.msra.mxu1 %v1058_v48  ;;  %2212 = vmatpush1.bf16.msra.mxu0 %v1074_v49 }
 0x149   : > { %1924 = vmatprep.subr.bf16.mxu1 %v4632_v35  ;;  %2213 = vmatprep.subr.bf16.mxu0 %v4632_v35 }
 0x14a   : > { %v4059_v50 = vpop.f32.mrb[4].mxu0  ;;  %v4091_v51 = vpop.f32.mrb[4].mxu1 }
 0x14b   : > { %v819_v52 = vpop.f32.mrb[5].mxu0  ;;  %v947_v53 = vpop.f32.mrb[5].mxu1 }
 0x14c   : > { %v4060_v54 = vpop.f32.mrb[6].mxu0  ;;  %v4092_v55 = vpop.f32.mrb[6].mxu1  ;;  %1925 = vmatpush1.bf16.msra.mxu1 %v1059_v44  ;;  %2214 = vmatpush1.bf16.msra.mxu0 %v1075_v45 }
 0x14d   : > { %v1061_v56 = vpack.c.bf16 %v4060_v54, %v4059_v50  ;;  %v1077_v57 = vpack.c.bf16 %v4092_v55, %v4091_v51  ;;  %v822_v58 = vpop.f32.mrb[7].mxu0  ;;  %v950_v59 = vpop.f32.mrb[7].mxu1  ;;  %1926 = vmatprep.subr.bf16.mxu1 %v4632_v35  ;;  %2215 = vmatprep.subr.bf16.mxu0 %v4632_v35 }
 0x14e   : > { %v1060_v60 = vpack.c.bf16 %v822_v58, %v819_v52  ;;  %v1076_v61 = vpack.c.bf16 %v950_v59, %v947_v53 }
 0x150   : > { %1927 = vmatpush1.bf16.msra.mxu1 %v1060_v60  ;;  %2216 = vmatpush1.bf16.msra.mxu0 %v1076_v61 }
 0x151   : > { %1928 = vmatprep.subr.bf16.mxu1 %v4632_v35  ;;  %2217 = vmatprep.subr.bf16.mxu0 %v4632_v35 }
 0x152   : > { %v4063_v62 = vpop.f32.mrb[8].mxu0  ;;  %v4095_v63 = vpop.f32.mrb[8].mxu1 }
 0x153   : > { %v835_v0 = vpop.f32.mrb[9].mxu0  ;;  %v963_v1 = vpop.f32.mrb[9].mxu1 }
 0x154   : > { %v4064_v2 = vpop.f32.mrb[10].mxu0  ;;  %v4096_v3 = vpop.f32.mrb[10].mxu1  ;;  %1929 = vmatpush1.bf16.msra.mxu1 %v1061_v56  ;;  %2218 = vmatpush1.bf16.msra.mxu0 %v1077_v57 }
 0x155   : > { %v1063_v4 = vpack.c.bf16 %v4064_v2, %v4063_v62  ;;  %v1079_v5 = vpack.c.bf16 %v4096_v3, %v4095_v63  ;;  %v838_v6 = vpop.f32.mrb[11].mxu0  ;;  %v966_v7 = vpop.f32.mrb[11].mxu1  ;;  %1930 = vmatprep.subr.bf16.mxu1 %v4632_v35  ;;  %2219 = vmatprep.subr.bf16.mxu0 %v4632_v35 }
 0x156   : > { %v1062_v8 = vpack.c.bf16 %v838_v6, %v835_v0  ;;  %v1078_v9 = vpack.c.bf16 %v966_v7, %v963_v1  ;;  %v4303_v7 = vld [vmem:[%s4789_s14] ss:$16 sps:$4 sm:$0xff]  }
 0x158   : > { %1931 = vmatpush1.bf16.msra.mxu1 %v1062_v8  ;;  %2220 = vmatpush1.bf16.msra.mxu0 %v1078_v9  ;;  %v4306_v8 = vld [vmem:[%s4789_s14 + $0x8] ss:$16 sps:$4 sm:$0xff]   ;;  %v4309_v9 = vld [vmem:[%s4789_s14 + $0x24] ss:$16 sps:$4 sm:$0xff]  }
 0x159   : > { %1932 = vmatprep.subr.bf16.mxu1 %v4632_v35  ;;  %2221 = vmatprep.subr.bf16.mxu0 %v4632_v35 }
 0x15a   : > { %v4067_v10 = vpop.f32.mrb[12].mxu0  ;;  %v4099_v11 = vpop.f32.mrb[12].mxu1 }
 0x15b   : > { %v851_v12 = vpop.f32.mrb[13].mxu0  ;;  %v979_v13 = vpop.f32.mrb[13].mxu1 }
 0x15c   : > { %v4068_v14 = vpop.f32.mrb[14].mxu0  ;;  %v4100_v15 = vpop.f32.mrb[14].mxu1  ;;  %1933 = vmatpush1.bf16.msra.mxu1 %v1063_v4  ;;  %2222 = vmatpush1.bf16.msra.mxu0 %v1079_v5 }
 0x15d   : > { %v1065_v16 = vpack.c.bf16 %v4068_v14, %v4067_v10  ;;  %v1081_v17 = vpack.c.bf16 %v4100_v15, %v4099_v11  ;;  %v854_v18 = vpop.f32.mrb[15].mxu0  ;;  %v982_v19 = vpop.f32.mrb[15].mxu1  ;;  %1934 = vmatprep.subr.bf16.mxu1 %v4632_v35  ;;  %2223 = vmatprep.subr.bf16.mxu0 %v4632_v35  ;;  %v4311_v10 = vld [vmem:[%s4789_s14 + $0x2c] ss:$16 sps:$4 sm:$0xff]   ;;  %v4313_v11 = vld [vmem:[%s4789_s14 + $0x20] ss:$16 sps:$4 sm:$0xff]  }
 0x15e   : > { %v1064_v20 = vpack.c.bf16 %v854_v18, %v851_v12  ;;  %v1080_v21 = vpack.c.bf16 %v982_v19, %v979_v13  ;;  %v4314_v12 = vld [vmem:[%s4789_s14 + $0x28] ss:$16 sps:$4 sm:$0xff]   ;;  %v4315_v13 = vld [vmem:[%s4789_s14 + $0x44] ss:$16 sps:$4 sm:$0xff]   ;;  %v4319_v14 = vld [vmem:[%s4789_s14 + $0x40] ss:$16 sps:$4 sm:$0xff]  }
 0x15f   : > { %v4320_v15 = vld [vmem:[%s4789_s14 + $0x48] ss:$16 sps:$4 sm:$0xff]   ;;  %v4325_v18 = vld [vmem:[%s4789_s14 + $0x60] ss:$16 sps:$4 sm:$0xff]  }
 0x160   : > { %1935 = vmatpush1.bf16.msra.mxu1 %v1064_v20  ;;  %2224 = vmatpush1.bf16.msra.mxu0 %v1080_v21  ;;  %v4326_v19 = vld [vmem:[%s4789_s14 + $0x68] ss:$16 sps:$4 sm:$0xff]   ;;  %v4327_v20 = vld [vmem:[%s4789_s14 + $0x84] ss:$16 sps:$4 sm:$0xff]   ;;  %v4329_v21 = vld [vmem:[%s4789_s14 + $0x8c] ss:$16 sps:$4 sm:$0xff]  }
 0x161   : > { %1936 = vmatprep.subr.bf16.mxu1 %v4632_v35  ;;  %2225 = vmatprep.subr.bf16.mxu0 %v4632_v35 }
 0x162   : > { %v4071_v22 = vpop.f32.mrb[16].mxu0  ;;  %v4103_v23 = vpop.f32.mrb[16].mxu1 }
 0x163   : > { %v867_v24 = vpop.f32.mrb[17].mxu0  ;;  %v995_v25 = vpop.f32.mrb[17].mxu1 }
 0x164   : > { %v4072_v26 = vpop.f32.mrb[18].mxu0  ;;  %v4104_v27 = vpop.f32.mrb[18].mxu1  ;;  %1937 = vmatpush1.bf16.msra.mxu1 %v1065_v16  ;;  %2226 = vmatpush1.bf16.msra.mxu0 %v1081_v17  ;;  %v4321_v16 = vld [vmem:[%s4789_s14 + $0x64] ss:$16 sps:$4 sm:$0xff]   ;;  %v4323_v17 = vld [vmem:[%s4789_s14 + $0x6c] ss:$16 sps:$4 sm:$0xff]  }
 0x165   : > { %v1067_v28 = vpack.c.bf16 %v4072_v26, %v4071_v22  ;;  %v1083_v29 = vpack.c.bf16 %v4104_v27, %v4103_v23  ;;  %v870_v30 = vpop.f32.mrb[19].mxu0  ;;  %v998_v31 = vpop.f32.mrb[19].mxu1  ;;  %1938 = vmatprep.subr.bf16.mxu1 %v4632_v35  ;;  %2227 = vmatprep.subr.bf16.mxu0 %v4632_v35  ;;  %v4331_v22 = vld [vmem:[%s4789_s14 + $0x80] ss:$16 sps:$4 sm:$0xff]   ;;  %v4332_v23 = vld [vmem:[%s4789_s14 + $0x88] ss:$16 sps:$4 sm:$0xff]  }
 0x166   : > { %v1066_v32 = vpack.c.bf16 %v870_v30, %v867_v24  ;;  %v1082_v33 = vpack.c.bf16 %v998_v31, %v995_v25  ;;  %v4333_v24 = vld [vmem:[%s4789_s14 + $0xa4] ss:$16 sps:$4 sm:$0xff]   ;;  %v4335_v25 = vld [vmem:[%s4789_s14 + $0xac] ss:$16 sps:$4 sm:$0xff]   ;;  %v4337_v26 = vld [vmem:[%s4789_s14 + $0xa0] ss:$16 sps:$4 sm:$0xff]  }
 0x167   : > { %v4338_v27 = vld [vmem:[%s4789_s14 + $0xa8] ss:$16 sps:$4 sm:$0xff]   ;;  %v4343_v30 = vld [vmem:[%s4789_s14 + $0xc0] ss:$16 sps:$4 sm:$0xff]  }
 0x168   : > { %1939 = vmatpush1.bf16.msra.mxu1 %v1066_v32  ;;  %2228 = vmatpush1.bf16.msra.mxu0 %v1082_v33  ;;  %v4344_v31 = vld [vmem:[%s4789_s14 + $0xc8] ss:$16 sps:$4 sm:$0xff]   ;;  %v4345_v32 = vld [vmem:[%s4789_s14 + $0xe4] ss:$16 sps:$4 sm:$0xff]   ;;  %v4347_v33 = vld [vmem:[%s4789_s14 + $0xec] ss:$16 sps:$4 sm:$0xff]  }
 0x169   : > { %1940 = vmatprep.subr.bf16.mxu1 %v4632_v35  ;;  %2229 = vmatprep.subr.bf16.mxu0 %v4632_v35 }
 0x16a   : > { %v4075_v34 = vpop.f32.mrb[20].mxu0  ;;  %v4107_v36 = vpop.f32.mrb[20].mxu1 }
 0x16b   : > { %v883_v37 = vpop.f32.mrb[21].mxu0  ;;  %v1011_v38 = vpop.f32.mrb[21].mxu1 }
 0x16c   : > { %v4076_v39 = vpop.f32.mrb[22].mxu0  ;;  %v4108_v40 = vpop.f32.mrb[22].mxu1  ;;  %1941 = vmatpush1.bf16.msra.mxu1 %v1067_v28  ;;  %2230 = vmatpush1.bf16.msra.mxu0 %v1083_v29  ;;  %v4339_v28 = vld [vmem:[%s4789_s14 + $0xc4] ss:$16 sps:$4 sm:$0xff]   ;;  %v4341_v29 = vld [vmem:[%s4789_s14 + $0xcc] ss:$16 sps:$4 sm:$0xff]  }
 0x16d   : > { %v1069_v41 = vpack.c.bf16 %v4076_v39, %v4075_v34  ;;  %v1085_v42 = vpack.c.bf16 %v4108_v40, %v4107_v36  ;;  %v886_v43 = vpop.f32.mrb[23].mxu0  ;;  %v1014_v44 = vpop.f32.mrb[23].mxu1  ;;  %1942 = vmatprep.subr.bf16.mxu1 %v4632_v35  ;;  %2231 = vmatprep.subr.bf16.mxu0 %v4632_v35  ;;  %v4349_v34 = vld [vmem:[%s4789_s14 + $0xe0] ss:$16 sps:$4 sm:$0xff]   ;;  %v4350_v36 = vld [vmem:[%s4789_s14 + $0xe8] ss:$16 sps:$4 sm:$0xff]  }
 0x16e   : > { %v1068_v45 = vpack.c.bf16 %v886_v43, %v883_v37  ;;  %v1084_v46 = vpack.c.bf16 %v1014_v44, %v1011_v38  ;;  %v4351_v37 = vld [vmem:[%s4789_s14 + $0x104] ss:$16 sps:$4 sm:$0xff]   ;;  %v4353_v38 = vld [vmem:[%s4789_s14 + $0x10c] ss:$16 sps:$4 sm:$0xff]   ;;  %v4355_v39 = vld [vmem:[%s4789_s14 + $0x100] ss:$16 sps:$4 sm:$0xff]  }
 0x16f   : > { %v4356_v40 = vld [vmem:[%s4789_s14 + $0x108] ss:$16 sps:$4 sm:$0xff]   ;;  %v4361_v43 = vld [vmem:[%s4789_s14 + $0x120] ss:$16 sps:$4 sm:$0xff]  }
 0x170   : > { %1943 = vmatpush1.bf16.msra.mxu1 %v1068_v45  ;;  %2232 = vmatpush1.bf16.msra.mxu0 %v1084_v46  ;;  %v4362_v44 = vld [vmem:[%s4789_s14 + $0x128] ss:$16 sps:$4 sm:$0xff]   ;;  %v4363_v45 = vld [vmem:[%s4789_s14 + $0x144] ss:$16 sps:$4 sm:$0xff]   ;;  %v4365_v46 = vld [vmem:[%s4789_s14 + $0x14c] ss:$16 sps:$4 sm:$0xff]  }
 0x171   : > { %1944 = vmatprep.subr.bf16.mxu1 %v4632_v35  ;;  %2233 = vmatprep.subr.bf16.mxu0 %v4632_v35 }
 0x172   : > { %v4079_v47 = vpop.f32.mrb[24].mxu0  ;;  %v4111_v48 = vpop.f32.mrb[24].mxu1 }
 0x173   : > { %v899_v49 = vpop.f32.mrb[25].mxu0  ;;  %v1027_v50 = vpop.f32.mrb[25].mxu1 }
 0x174   : > { %v4080_v51 = vpop.f32.mrb[26].mxu0  ;;  %v4112_v52 = vpop.f32.mrb[26].mxu1  ;;  %1945 = vmatpush1.bf16.msra.mxu1 %v1069_v41  ;;  %2234 = vmatpush1.bf16.msra.mxu0 %v1085_v42  ;;  %v4357_v41 = vld [vmem:[%s4789_s14 + $0x124] ss:$16 sps:$4 sm:$0xff]   ;;  %v4359_v42 = vld [vmem:[%s4789_s14 + $0x12c] ss:$16 sps:$4 sm:$0xff]  }
 0x175   : > { %v1071_v53 = vpack.c.bf16 %v4080_v51, %v4079_v47  ;;  %v1087_v54 = vpack.c.bf16 %v4112_v52, %v4111_v48  ;;  %v902_v55 = vpop.f32.mrb[27].mxu0  ;;  %v1030_v56 = vpop.f32.mrb[27].mxu1  ;;  %1946 = vmatprep.subr.bf16.mxu1 %v4632_v35  ;;  %2235 = vmatprep.subr.bf16.mxu0 %v4632_v35  ;;  %v4367_v47 = vld [vmem:[%s4789_s14 + $0x140] ss:$16 sps:$4 sm:$0xff]   ;;  %v4368_v48 = vld [vmem:[%s4789_s14 + $0x148] ss:$16 sps:$4 sm:$0xff]  }
 0x176   : > { %v1070_v57 = vpack.c.bf16 %v902_v55, %v899_v49  ;;  %v1086_v58 = vpack.c.bf16 %v1030_v56, %v1027_v50  ;;  %v4369_v49 = vld [vmem:[%s4789_s14 + $0x164] ss:$16 sps:$4 sm:$0xff]   ;;  %v4371_v50 = vld [vmem:[%s4789_s14 + $0x16c] ss:$16 sps:$4 sm:$0xff]   ;;  %v4373_v51 = vld [vmem:[%s4789_s14 + $0x160] ss:$16 sps:$4 sm:$0xff]  }
 0x177   : > { %v4374_v52 = vld [vmem:[%s4789_s14 + $0x168] ss:$16 sps:$4 sm:$0xff]   ;;  %v4379_v55 = vld [vmem:[%s4789_s14 + $0x180] ss:$16 sps:$4 sm:$0xff]  }
 0x178   : > { %1947 = vmatpush1.bf16.msra.mxu1 %v1070_v57  ;;  %2236 = vmatpush1.bf16.msra.mxu0 %v1086_v58  ;;  %v4380_v56 = vld [vmem:[%s4789_s14 + $0x188] ss:$16 sps:$4 sm:$0xff]   ;;  %v4381_v57 = vld [vmem:[%s4789_s14 + $0x1a4] ss:$16 sps:$4 sm:$0xff]   ;;  %v4383_v58 = vld [vmem:[%s4789_s14 + $0x1ac] ss:$16 sps:$4 sm:$0xff]  }
 0x179   : > { %1948 = vmatprep.subr.bf16.mxu1 %v4632_v35  ;;  %2237 = vmatprep.subr.bf16.mxu0 %v4632_v35 }
 0x17a   : > { %v4083_v59 = vpop.f32.mrb[28].mxu0  ;;  %v4115_v60 = vpop.f32.mrb[28].mxu1 }
 0x17b   : > { %v915_v61 = vpop.f32.mrb[29].mxu0  ;;  %v1043_v62 = vpop.f32.mrb[29].mxu1 }
 0x17c   : > { %v4084_v63 = vpop.f32.mrb[30].mxu0  ;;  %v4116_v0 = vpop.f32.mrb[30].mxu1  ;;  %1949 = vmatpush1.bf16.msra.mxu1 %v1071_v53  ;;  %2238 = vmatpush1.bf16.msra.mxu0 %v1087_v54  ;;  %v4375_v53 = vld [vmem:[%s4789_s14 + $0x184] ss:$16 sps:$4 sm:$0xff]   ;;  %v4377_v54 = vld [vmem:[%s4789_s14 + $0x18c] ss:$16 sps:$4 sm:$0xff]  }
 0x17d   : > { %v1073_v1 = vpack.c.bf16 %v4084_v63, %v4083_v59  ;;  %v1089_v2 = vpack.c.bf16 %v4116_v0, %v4115_v60  ;;  %v918_v3 = vpop.f32.mrb[31].mxu0  ;;  %v1046_v4 = vpop.f32.mrb[31].mxu1  ;;  %1950 = vmatprep.subr.bf16.mxu1 %v4632_v35  ;;  %2239 = vmatprep.subr.bf16.mxu0 %v4632_v35  ;;  %v4385_v59 = vld [vmem:[%s4789_s14 + $0x1a0] ss:$16 sps:$4 sm:$0xff]   ;;  %v4386_v60 = vld [vmem:[%s4789_s14 + $0x1a8] ss:$16 sps:$4 sm:$0xff]  }
 0x17e   : > { %v1072_v5 = vpack.c.bf16 %v918_v3, %v915_v61  ;;  %v1088_v6 = vpack.c.bf16 %v1046_v4, %v1043_v62  ;;  %v4387_v61 = vld [vmem:[%s4789_s14 + $0x1c4] ss:$16 sps:$4 sm:$0xff]   ;;  %v4389_v62 = vld [vmem:[%s4789_s14 + $0x1cc] ss:$16 sps:$4 sm:$0xff]   ;;  %v4391_v63 = vld [vmem:[%s4789_s14 + $0x1c0] ss:$16 sps:$4 sm:$0xff]  }
 0x17f   : > { %v4392_v0 = vld [vmem:[%s4789_s14 + $0x1c8] ss:$16 sps:$4 sm:$0xff]   ;;  %v4397_v3 = vld [vmem:[%s4789_s14 + $0x1e0] ss:$16 sps:$4 sm:$0xff]  }
 0x180   : > { %1951 = vmatpush1.bf16.msra.mxu1 %v1072_v5  ;;  %2240 = vmatpush1.bf16.msra.mxu0 %v1088_v6  ;;  %v4398_v4 = vld [vmem:[%s4789_s14 + $0x1e8] ss:$16 sps:$4 sm:$0xff]   ;;  %v4399_v5 = vld [vmem:[%s4789_s14 + $0x204] ss:$16 sps:$4 sm:$0xff]   ;;  %v4401_v6 = vld [vmem:[%s4789_s14 + $0x20c] ss:$16 sps:$4 sm:$0xff]  }
 0x181   : > { %1952 = vmatprep.subr.bf16.mxu1 %v4632_v35  ;;  %2241 = vmatprep.subr.bf16.mxu0 %v4632_v35  ;;  %v4317_v35 = vld [vmem:[%s4789_s14 + $0x4c] ss:$16 sps:$4 sm:$0xff]  }
 0x184   : > { %1953 = vmatpush1.bf16.msra.mxu1 %v1073_v1  ;;  %2242 = vmatpush1.bf16.msra.mxu0 %v1089_v2  ;;  %v4393_v1 = vld [vmem:[%s4789_s14 + $0x1e4] ss:$16 sps:$4 sm:$0xff]   ;;  %v4395_v2 = vld [vmem:[%s4789_s14 + $0x1ec] ss:$16 sps:$4 sm:$0xff]  }
 0x187   : > { %1955 = vmatmul.mubr.bf16.vlgmr.msra.gmra.mrb[32].mxu1 %v4303_v7  ;;  %2244 = vmatmul.mubr.bf16.vlgmr.msra.gmra.mrb[32].mxu0 %v4306_v8  ;;  %v4403_v7 = vld [vmem:[%s4789_s14 + $0x200] ss:$16 sps:$4 sm:$0xff]   ;;  %v4404_v8 = vld [vmem:[%s4789_s14 + $0x208] ss:$16 sps:$4 sm:$0xff]  }
 0x188   : > { %1962 = vmatprep.mubr.bf16.mxu1 %v4309_v9  ;;  %2251 = vmatprep.mubr.bf16.mxu0 %v4311_v10  ;;  %v4405_v9 = vld [vmem:[%s4789_s14 + $0x224] ss:$16 sps:$4 sm:$0xff]   ;;  %v4407_v10 = vld [vmem:[%s4789_s14 + $0x22c] ss:$16 sps:$4 sm:$0xff]  }
 0x18f   : > { %1963 = vmatmul.mubr.bf16.gmra.mrb[36].mxu1 %v4313_v11  ;;  %2252 = vmatmul.mubr.bf16.gmra.mrb[36].mxu0 %v4314_v12  ;;  %v4409_v11 = vld [vmem:[%s4789_s14 + $0x220] ss:$16 sps:$4 sm:$0xff]   ;;  %v4410_v12 = vld [vmem:[%s4789_s14 + $0x228] ss:$16 sps:$4 sm:$0xff]  }
 0x190   : > { %1970 = vmatprep.mubr.bf16.mxu1 %v4315_v13  ;;  %2259 = vmatprep.mubr.bf16.mxu0 %v4317_v35  ;;  %v4411_v13 = vld [vmem:[%s4789_s14 + $0x244] ss:$16 sps:$4 sm:$0xff]   ;;  %v4413_v35 = vld [vmem:[%s4789_s14 + $0x24c] ss:$16 sps:$4 sm:$0xff]  }
 0x197   : > { %1971 = vmatmul.mubr.bf16.gmra.mrb[40].mxu1 %v4319_v14  ;;  %2260 = vmatmul.mubr.bf16.gmra.mrb[40].mxu0 %v4320_v15  ;;  %v4415_v14 = vld [vmem:[%s4789_s14 + $0x240] ss:$16 sps:$4 sm:$0xff]   ;;  %v4416_v15 = vld [vmem:[%s4789_s14 + $0x248] ss:$16 sps:$4 sm:$0xff]  }
 0x198   : > { %1978 = vmatprep.mubr.bf16.mxu1 %v4321_v16  ;;  %2267 = vmatprep.mubr.bf16.mxu0 %v4323_v17  ;;  %v4417_v16 = vld [vmem:[%s4789_s14 + $0x264] ss:$16 sps:$4 sm:$0xff]   ;;  %v4419_v17 = vld [vmem:[%s4789_s14 + $0x26c] ss:$16 sps:$4 sm:$0xff]  }
 0x19f   : > { %1979 = vmatmul.mubr.bf16.gmra.mrb[44].mxu1 %v4325_v18  ;;  %2268 = vmatmul.mubr.bf16.gmra.mrb[44].mxu0 %v4326_v19  ;;  %v4421_v18 = vld [vmem:[%s4789_s14 + $0x260] ss:$16 sps:$4 sm:$0xff]   ;;  %v4422_v19 = vld [vmem:[%s4789_s14 + $0x268] ss:$16 sps:$4 sm:$0xff]  }
 0x1a0   : > { %1986 = vmatprep.mubr.bf16.mxu1 %v4327_v20  ;;  %2275 = vmatprep.mubr.bf16.mxu0 %v4329_v21  ;;  %v4423_v20 = vld [vmem:[%s4789_s14 + $0x284] ss:$16 sps:$4 sm:$0xff]   ;;  %v4425_v21 = vld [vmem:[%s4789_s14 + $0x28c] ss:$16 sps:$4 sm:$0xff]  }
 0x1a7   : > { %1987 = vmatmul.mubr.bf16.gmra.mrb[48].mxu1 %v4331_v22  ;;  %2276 = vmatmul.mubr.bf16.gmra.mrb[48].mxu0 %v4332_v23  ;;  %v4427_v22 = vld [vmem:[%s4789_s14 + $0x280] ss:$16 sps:$4 sm:$0xff]   ;;  %v4428_v23 = vld [vmem:[%s4789_s14 + $0x288] ss:$16 sps:$4 sm:$0xff]  }
 0x1a8   : > { %1994 = vmatprep.mubr.bf16.mxu1 %v4333_v24  ;;  %2283 = vmatprep.mubr.bf16.mxu0 %v4335_v25  ;;  %v4429_v24 = vld [vmem:[%s4789_s14 + $0x2a4] ss:$16 sps:$4 sm:$0xff]   ;;  %v4431_v25 = vld [vmem:[%s4789_s14 + $0x2ac] ss:$16 sps:$4 sm:$0xff]  }
 0x1af   : > { %1995 = vmatmul.mubr.bf16.gmra.mrb[52].mxu1 %v4337_v26  ;;  %2284 = vmatmul.mubr.bf16.gmra.mrb[52].mxu0 %v4338_v27  ;;  %v4433_v26 = vld [vmem:[%s4789_s14 + $0x2a0] ss:$16 sps:$4 sm:$0xff]   ;;  %v4434_v27 = vld [vmem:[%s4789_s14 + $0x2a8] ss:$16 sps:$4 sm:$0xff]  }
 0x1b0   : > { %2002 = vmatprep.mubr.bf16.mxu1 %v4339_v28  ;;  %2291 = vmatprep.mubr.bf16.mxu0 %v4341_v29  ;;  %v4435_v28 = vld [vmem:[%s4789_s14 + $0x2c4] ss:$16 sps:$4 sm:$0xff]   ;;  %v4437_v29 = vld [vmem:[%s4789_s14 + $0x2cc] ss:$16 sps:$4 sm:$0xff]  }
 0x1b7   : > { %2003 = vmatmul.mubr.bf16.gmra.mrb[56].mxu1 %v4343_v30  ;;  %2292 = vmatmul.mubr.bf16.gmra.mrb[56].mxu0 %v4344_v31  ;;  %v4439_v30 = vld [vmem:[%s4789_s14 + $0x2c0] ss:$16 sps:$4 sm:$0xff]   ;;  %v4440_v31 = vld [vmem:[%s4789_s14 + $0x2c8] ss:$16 sps:$4 sm:$0xff]  }
 0x1b8   : > { %2010 = vmatprep.mubr.bf16.mxu1 %v4345_v32  ;;  %2299 = vmatprep.mubr.bf16.mxu0 %v4347_v33  ;;  %v4441_v32 = vld [vmem:[%s4789_s14 + $0x2e4] ss:$16 sps:$4 sm:$0xff]   ;;  %v4443_v33 = vld [vmem:[%s4789_s14 + $0x2ec] ss:$16 sps:$4 sm:$0xff]  }
 0x1bf   : > { %2011 = vmatmul.mubr.bf16.gmra.mrb[60].mxu1 %v4349_v34  ;;  %2300 = vmatmul.mubr.bf16.gmra.mrb[60].mxu0 %v4350_v36  ;;  %v4445_v34 = vld [vmem:[%s4789_s14 + $0x2e0] ss:$16 sps:$4 sm:$0xff]   ;;  %v4446_v36 = vld [vmem:[%s4789_s14 + $0x2e8] ss:$16 sps:$4 sm:$0xff]  }
 0x1c0   : > { %2018 = vmatprep.mubr.bf16.mxu1 %v4351_v37  ;;  %2307 = vmatprep.mubr.bf16.mxu0 %v4353_v38  ;;  %v4447_v37 = vld [vmem:[%s4789_s14 + $0x304] ss:$16 sps:$4 sm:$0xff]   ;;  %v4449_v38 = vld [vmem:[%s4789_s14 + $0x30c] ss:$16 sps:$4 sm:$0xff]  }
 0x1c7   : > { %2019 = vmatmul.mubr.bf16.gmra.mrb[64].mxu1 %v4355_v39  ;;  %2308 = vmatmul.mubr.bf16.gmra.mrb[64].mxu0 %v4356_v40  ;;  %v4451_v39 = vld [vmem:[%s4789_s14 + $0x300] ss:$16 sps:$4 sm:$0xff]   ;;  %v4452_v40 = vld [vmem:[%s4789_s14 + $0x308] ss:$16 sps:$4 sm:$0xff]  }
 0x1c8   : > { %2026 = vmatprep.mubr.bf16.mxu1 %v4357_v41  ;;  %2315 = vmatprep.mubr.bf16.mxu0 %v4359_v42  ;;  %v4453_v41 = vld [vmem:[%s4789_s14 + $0x324] ss:$16 sps:$4 sm:$0xff]   ;;  %v4455_v42 = vld [vmem:[%s4789_s14 + $0x32c] ss:$16 sps:$4 sm:$0xff]  }
 0x1cf   : > { %2027 = vmatmul.mubr.bf16.gmra.mrb[68].mxu1 %v4361_v43  ;;  %2316 = vmatmul.mubr.bf16.gmra.mrb[68].mxu0 %v4362_v44  ;;  %v4457_v43 = vld [vmem:[%s4789_s14 + $0x320] ss:$16 sps:$4 sm:$0xff]   ;;  %v4458_v44 = vld [vmem:[%s4789_s14 + $0x328] ss:$16 sps:$4 sm:$0xff]  }
 0x1d0   : > { %2034 = vmatprep.mubr.bf16.mxu1 %v4363_v45  ;;  %2323 = vmatprep.mubr.bf16.mxu0 %v4365_v46  ;;  %v4459_v45 = vld [vmem:[%s4789_s14 + $0x344] ss:$16 sps:$4 sm:$0xff]   ;;  %v4461_v46 = vld [vmem:[%s4789_s14 + $0x34c] ss:$16 sps:$4 sm:$0xff]  }
 0x1d7   : > { %2035 = vmatmul.mubr.bf16.gmra.mrb[72].mxu1 %v4367_v47  ;;  %2324 = vmatmul.mubr.bf16.gmra.mrb[72].mxu0 %v4368_v48  ;;  %v4463_v47 = vld [vmem:[%s4789_s14 + $0x340] ss:$16 sps:$4 sm:$0xff]   ;;  %v4464_v48 = vld [vmem:[%s4789_s14 + $0x348] ss:$16 sps:$4 sm:$0xff]  }
 0x1d8   : > { %2042 = vmatprep.mubr.bf16.mxu1 %v4369_v49  ;;  %2331 = vmatprep.mubr.bf16.mxu0 %v4371_v50  ;;  %v4465_v49 = vld [vmem:[%s4789_s14 + $0x364] ss:$16 sps:$4 sm:$0xff]   ;;  %v4467_v50 = vld [vmem:[%s4789_s14 + $0x36c] ss:$16 sps:$4 sm:$0xff]  }
 0x1df   : > { %2043 = vmatmul.mubr.bf16.gmra.mrb[76].mxu1 %v4373_v51  ;;  %2332 = vmatmul.mubr.bf16.gmra.mrb[76].mxu0 %v4374_v52  ;;  %v1090_v52 = vld [vmem:[%s4810_s28] sm:$0xff] }
 0x1e0   : > { %2050 = vmatprep.mubr.bf16.mxu1 %v4375_v53  ;;  %2339 = vmatprep.mubr.bf16.mxu0 %v4377_v54  ;;  %v4469_v54 = vld [vmem:[%s4789_s14 + $0x360] ss:$16 sps:$4 sm:$0xff]  }
 0x1e7   : > { %2051 = vmatmul.mubr.bf16.gmra.mrb[80].mxu1 %v4379_v55  ;;  %2340 = vmatmul.mubr.bf16.gmra.mrb[80].mxu0 %v4380_v56 }
 0x1e8   : > { %2058 = vmatprep.mubr.bf16.mxu1 %v4381_v57  ;;  %2347 = vmatprep.mubr.bf16.mxu0 %v4383_v58  ;;  %v1091_v58 = vld [vmem:[%s4810_s28 + $0x8] sm:$0xff] }
 0x1ef   : > { %2059 = vmatmul.mubr.bf16.gmra.mrb[84].mxu1 %v4385_v59  ;;  %2348 = vmatmul.mubr.bf16.gmra.mrb[84].mxu0 %v4386_v60  ;;  %v4470_v59 = vld [vmem:[%s4789_s14 + $0x368] ss:$16 sps:$4 sm:$0xff]  }
 0x1f0   : > { %2066 = vmatprep.mubr.bf16.mxu1 %v4387_v61  ;;  %2355 = vmatprep.mubr.bf16.mxu0 %v4389_v62  ;;  %v4471_v62 = vld [vmem:[%s4789_s14 + $0x384] ss:$16 sps:$4 sm:$0xff]  }
 0x1f7   : > { %2067 = vmatmul.mubr.bf16.gmra.mrb[88].mxu1 %v4391_v63  ;;  %2356 = vmatmul.mubr.bf16.gmra.mrb[88].mxu0 %v4392_v0  ;;  %v4473_v63 = vld [vmem:[%s4789_s14 + $0x38c] ss:$16 sps:$4 sm:$0xff]  }
 0x1f8   : > { %2074 = vmatprep.mubr.bf16.mxu1 %v4393_v1  ;;  %2363 = vmatprep.mubr.bf16.mxu0 %v4395_v2 }
 0x1ff   : > { %2075 = vmatmul.mubr.bf16.gmra.mrb[92].mxu1 %v4397_v3  ;;  %2364 = vmatmul.mubr.bf16.gmra.mrb[92].mxu0 %v4398_v4 }
 0x200   : > { %2082 = vmatprep.mubr.bf16.mxu1 %v4399_v5  ;;  %2371 = vmatprep.mubr.bf16.mxu0 %v4401_v6  ;;  %v1092_v6 = vld [vmem:[%s4810_s28 + $0x10] sm:$0xff] }
 0x207   : > { %2083 = vmatmul.mubr.bf16.gmra.mrb[96].mxu1 %v4403_v7  ;;  %2372 = vmatmul.mubr.bf16.gmra.mrb[96].mxu0 %v4404_v8  ;;  %v4475_v8 = vld [vmem:[%s4789_s14 + $0x380] ss:$16 sps:$4 sm:$0xff]  }
 0x208   : > { %2090 = vmatprep.mubr.bf16.mxu1 %v4405_v9  ;;  %2379 = vmatprep.mubr.bf16.mxu0 %v4407_v10 }
 0x20f   : > { %2091 = vmatmul.mubr.bf16.gmra.mrb[100].mxu1 %v4409_v11  ;;  %2380 = vmatmul.mubr.bf16.gmra.mrb[100].mxu0 %v4410_v12  ;;  %v1093_v12 = vld [vmem:[%s4810_s28 + $0x18] sm:$0xff] }
 0x210   : > { %2098 = vmatprep.mubr.bf16.mxu1 %v4411_v13  ;;  %2387 = vmatprep.mubr.bf16.mxu0 %v4413_v35  ;;  %v4476_v13 = vld [vmem:[%s4789_s14 + $0x388] ss:$16 sps:$4 sm:$0xff]  }
 0x217   : > { %2099 = vmatmul.mubr.bf16.gmra.mrb[104].mxu1 %v4415_v14  ;;  %2388 = vmatmul.mubr.bf16.gmra.mrb[104].mxu0 %v4416_v15  ;;  %v4477_v15 = vld [vmem:[%s4789_s14 + $0x3a4] ss:$16 sps:$4 sm:$0xff]  }
 0x218   : > { %2106 = vmatprep.mubr.bf16.mxu1 %v4417_v16  ;;  %2395 = vmatprep.mubr.bf16.mxu0 %v4419_v17  ;;  %v4479_v16 = vld [vmem:[%s4789_s14 + $0x3ac] ss:$16 sps:$4 sm:$0xff]  }
 0x21f   : > { %2107 = vmatmul.mubr.bf16.gmra.mrb[108].mxu1 %v4421_v18  ;;  %2396 = vmatmul.mubr.bf16.gmra.mrb[108].mxu0 %v4422_v19 }
 0x220   : > { %2114 = vmatprep.mubr.bf16.mxu1 %v4423_v20  ;;  %2403 = vmatprep.mubr.bf16.mxu0 %v4425_v21 }
 0x227   : > { %2115 = vmatmul.mubr.bf16.gmra.mrb[112].mxu1 %v4427_v22  ;;  %2404 = vmatmul.mubr.bf16.gmra.mrb[112].mxu0 %v4428_v23  ;;  %v1094_v23 = vld [vmem:[%s4810_s28 + $0x20] sm:$0xff] }
 0x228   : > { %2122 = vmatprep.mubr.bf16.mxu1 %v4429_v24  ;;  %2411 = vmatprep.mubr.bf16.mxu0 %v4431_v25  ;;  %v4481_v25 = vld [vmem:[%s4789_s14 + $0x3a0] ss:$16 sps:$4 sm:$0xff]  }
 0x22f   : > { %2123 = vmatmul.mubr.bf16.gmra.mrb[116].mxu1 %v4433_v26  ;;  %2412 = vmatmul.mubr.bf16.gmra.mrb[116].mxu0 %v4434_v27 }
 0x230   : > { %2130 = vmatprep.mubr.bf16.mxu1 %v4435_v28  ;;  %2419 = vmatprep.mubr.bf16.mxu0 %v4437_v29  ;;  %v1095_v29 = vld [vmem:[%s4810_s28 + $0x28] sm:$0xff] }
 0x237   : > { %2131 = vmatmul.mubr.bf16.gmra.mrb[120].mxu1 %v4439_v30  ;;  %2420 = vmatmul.mubr.bf16.gmra.mrb[120].mxu0 %v4440_v31  ;;  %v4482_v30 = vld [vmem:[%s4789_s14 + $0x3a8] ss:$16 sps:$4 sm:$0xff]  }
 0x238   : > { %2138 = vmatprep.mubr.bf16.mxu1 %v4441_v32  ;;  %2427 = vmatprep.mubr.bf16.mxu0 %v4443_v33  ;;  %v4483_v33 = vld [vmem:[%s4789_s14 + $0x3c4] ss:$16 sps:$4 sm:$0xff]  }
 0x23f   : > { %2139 = vmatmul.mubr.bf16.gmra.mrb[124].mxu1 %v4445_v34  ;;  %2428 = vmatmul.mubr.bf16.gmra.mrb[124].mxu0 %v4446_v36  ;;  %v4485_v34 = vld [vmem:[%s4789_s14 + $0x3cc] ss:$16 sps:$4 sm:$0xff]  }
 0x240   : > { %2146 = vmatprep.mubr.bf16.mxu1 %v4447_v37  ;;  %2435 = vmatprep.mubr.bf16.mxu0 %v4449_v38 }
 0x247   : > { %2147 = vmatmul.mubr.bf16.gmra.mrb[128].mxu1 %v4451_v39  ;;  %2436 = vmatmul.mubr.bf16.gmra.mrb[128].mxu0 %v4452_v40 }
 0x248   : > { %2154 = vmatprep.mubr.bf16.mxu1 %v4453_v41  ;;  %2443 = vmatprep.mubr.bf16.mxu0 %v4455_v42  ;;  %v1096_v42 = vld [vmem:[%s4810_s28 + $0x30] sm:$0xff] }
 0x24f   : > { %2155 = vmatmul.mubr.bf16.gmra.mrb[132].mxu1 %v4457_v43  ;;  %2444 = vmatmul.mubr.bf16.gmra.mrb[132].mxu0 %v4458_v44  ;;  %v4487_v44 = vld [vmem:[%s4789_s14 + $0x3c0] ss:$16 sps:$4 sm:$0xff]  }
 0x250   : > { %2162 = vmatprep.mubr.bf16.mxu1 %v4459_v45  ;;  %2451 = vmatprep.mubr.bf16.mxu0 %v4461_v46 }
 0x257   : > { %2163 = vmatmul.mubr.bf16.gmra.mrb[136].mxu1 %v4463_v47  ;;  %2452 = vmatmul.mubr.bf16.gmra.mrb[136].mxu0 %v4464_v48  ;;  %v1097_v48 = vld [vmem:[%s4810_s28 + $0x38] sm:$0xff] }
 0x258   : > { %2170 = vmatprep.mubr.bf16.mxu1 %v4465_v49  ;;  %2459 = vmatprep.mubr.bf16.mxu0 %v4467_v50  ;;  %v4488_v49 = vld [vmem:[%s4789_s14 + $0x3c8] ss:$16 sps:$4 sm:$0xff]  }
 0x25a   : > { %v1956_v51 = vpop.f32.mrb[32].mxu1  ;;  %v2245_v53 = vpop.f32.mrb[32].mxu0 }
 0x25b   : > { %v2246_v55 = vadd.f32 %v2245_v53, %v1956_v51  ;;  %v1958_v56 = vpop.f32.mrb[33].mxu1  ;;  %v2247_v57 = vpop.f32.mrb[33].mxu0  ;;  %v4491_v53 = vld [vmem:[%s4789_s14 + $0x3ec] ss:$16 sps:$4 sm:$0xff]  }
 0x25c   : > { %v1959_v60 = vpop.f32.mrb[34].mxu1  ;;  %v2248_v61 = vpop.f32.mrb[34].mxu0 }
 0x25d   : > { %v2500_v0 = vadd.f32 %v2246_v55, %v1090_v52  ;;  %v2249_v1 = vadd.f32 %v2248_v61, %v1959_v60  ;;  %v1961_v2 = vpop.f32.mrb[35].mxu1  ;;  %v2250_v3 = vpop.f32.mrb[35].mxu0  ;;  %v4489_v52 = vld [vmem:[%s4789_s14 + $0x3e4] ss:$16 sps:$4 sm:$0xff]  }
 0x25e   : > { %v1098_v60 = vld [vmem:[%s4810_s28 + $0x40] sm:$0xff]  ;;  %v4494_v2 = vld [vmem:[%s4789_s14 + $0x3e8] ss:$16 sps:$4 sm:$0xff]  }
 0x25f   : > { %2564 = vst [vmem:[%s4810_s28] sm:$0xff] %v2500_v0  ;;  %v2501_v4 = vadd.f32 %v2249_v1, %v1091_v58  ;;  %2171 = vmatmul.mubr.bf16.gmra.mrb[140].mxu1 %v4469_v54  ;;  %2460 = vmatmul.mubr.bf16.gmra.mrb[140].mxu0 %v4470_v59  ;;  %v4493_v1 = vld [vmem:[%s4789_s14 + $0x3e0] ss:$16 sps:$4 sm:$0xff]  }
 0x260   : > { %2178 = vmatprep.mubr.bf16.mxu1 %v4471_v62  ;;  %2467 = vmatprep.mubr.bf16.mxu0 %v4473_v63 }
 0x261   : > { %2565 = vst [vmem:[%s4810_s28 + $0x8] sm:$0xff] %v2501_v4  ;;  %v1099_v4 = vld [vmem:[%s4810_s28 + $0x48] sm:$0xff] }
 0x262   : > { %v1964_v5 = vpop.f32.mrb[36].mxu1  ;;  %v2253_v7 = vpop.f32.mrb[36].mxu0 }
 0x263   : > { %v2254_v9 = vadd.f32 %v2253_v7, %v1964_v5  ;;  %v1966_v10 = vpop.f32.mrb[37].mxu1  ;;  %v2255_v11 = vpop.f32.mrb[37].mxu0 }
 0x264   : > { %v1967_v35 = vpop.f32.mrb[38].mxu1  ;;  %v2256_v14 = vpop.f32.mrb[38].mxu0 }
 0x265   : > { %v2502_v17 = vadd.f32 %v2254_v9, %v1092_v6  ;;  %v2257_v18 = vadd.f32 %v2256_v14, %v1967_v35  ;;  %v1969_v19 = vpop.f32.mrb[39].mxu1  ;;  %v2258_v20 = vpop.f32.mrb[39].mxu0 }
 0x267   : > { %2566 = vst [vmem:[%s4810_s28 + $0x10] sm:$0xff] %v2502_v17  ;;  %v2503_v21 = vadd.f32 %v2257_v18, %v1093_v12  ;;  %2179 = vmatmul.mubr.bf16.gmra.mrb[144].mxu1 %v4475_v8  ;;  %2468 = vmatmul.mubr.bf16.gmra.mrb[144].mxu0 %v4476_v13  ;;  %v1100_v12 = vld [vmem:[%s4810_s28 + $0x50] sm:$0xff]  ;;  %v1101_v17 = vld [vmem:[%s4810_s28 + $0x58] sm:$0xff] }
 0x268   : > { %2186 = vmatprep.mubr.bf16.mxu1 %v4477_v15  ;;  %2475 = vmatprep.mubr.bf16.mxu0 %v4479_v16 }
 0x269   : > { %2567 = vst [vmem:[%s4810_s28 + $0x18] sm:$0xff] %v2503_v21 }
 0x26a   : > { %v1972_v22 = vpop.f32.mrb[40].mxu1  ;;  %v2261_v24 = vpop.f32.mrb[40].mxu0 }
 0x26b   : > { %v2262_v26 = vadd.f32 %v2261_v24, %v1972_v22  ;;  %v1974_v27 = vpop.f32.mrb[41].mxu1  ;;  %v2263_v28 = vpop.f32.mrb[41].mxu0 }
 0x26c   : > { %v1975_v31 = vpop.f32.mrb[42].mxu1  ;;  %v2264_v32 = vpop.f32.mrb[42].mxu0 }
 0x26d   : > { %v2504_v36 = vadd.f32 %v2262_v26, %v1094_v23  ;;  %v2265_v37 = vadd.f32 %v2264_v32, %v1975_v31  ;;  %v1977_v38 = vpop.f32.mrb[43].mxu1  ;;  %v2266_v39 = vpop.f32.mrb[43].mxu0  ;;  %v1103_v31 = vld [vmem:[%s4810_s28 + $0x68] sm:$0xff] }
 0x26f   : > { %2568 = vst [vmem:[%s4810_s28 + $0x20] sm:$0xff] %v2504_v36  ;;  %v2505_v40 = vadd.f32 %v2265_v37, %v1095_v29  ;;  %2187 = vmatmul.mubr.bf16.gmra.mrb[148].mxu1 %v4481_v25  ;;  %2476 = vmatmul.mubr.bf16.gmra.mrb[148].mxu0 %v4482_v30  ;;  %v1102_v25 = vld [vmem:[%s4810_s28 + $0x60] sm:$0xff] }
 0x270   : > { %2194 = vmatprep.mubr.bf16.mxu1 %v4483_v33  ;;  %2483 = vmatprep.mubr.bf16.mxu0 %v4485_v34 }
 0x271   : > { %2569 = vst [vmem:[%s4810_s28 + $0x28] sm:$0xff] %v2505_v40  ;;  %v1104_v40 = vld [vmem:[%s4810_s28 + $0x70] sm:$0xff] }
 0x272   : > { %v1980_v41 = vpop.f32.mrb[44].mxu1  ;;  %v2269_v43 = vpop.f32.mrb[44].mxu0 }
 0x273   : > { %v2270_v45 = vadd.f32 %v2269_v43, %v1980_v41  ;;  %v1982_v46 = vpop.f32.mrb[45].mxu1  ;;  %v2271_v47 = vpop.f32.mrb[45].mxu0 }
 0x274   : > { %v1983_v50 = vpop.f32.mrb[46].mxu1  ;;  %v2272_v51 = vpop.f32.mrb[46].mxu0  ;;  %v1105_v46 = vld [vmem:[%s4810_s28 + $0x78] sm:$0xff] }
 0x275   : > { %v2506_v54 = vadd.f32 %v2270_v45, %v1096_v42  ;;  %v2273_v55 = vadd.f32 %v2272_v51, %v1983_v50  ;;  %v1985_v56 = vpop.f32.mrb[47].mxu1  ;;  %v2274_v57 = vpop.f32.mrb[47].mxu0 }
 0x277   : > { %2570 = vst [vmem:[%s4810_s28 + $0x30] sm:$0xff] %v2506_v54  ;;  %v2507_v58 = vadd.f32 %v2273_v55, %v1097_v48  ;;  %2195 = vmatmul.mubr.bf16.gmra.mrb[152].mxu1 %v4487_v44  ;;  %2484 = vmatmul.mubr.bf16.gmra.mrb[152].mxu0 %v4488_v49  ;;  %v1106_v54 = vld [vmem:[%s4810_s28 + $0x80] sm:$0xff] }
 0x278   : > { %2202 = vmatprep.mubr.bf16.mxu1 %v4489_v52  ;;  %2491 = vmatprep.mubr.bf16.mxu0 %v4491_v53 }
 0x279   : > { %2571 = vst [vmem:[%s4810_s28 + $0x38] sm:$0xff] %v2507_v58 }
 0x27a   : > { %v1988_v59 = vpop.f32.mrb[48].mxu1  ;;  %v2277_v61 = vpop.f32.mrb[48].mxu0 }
 0x27b   : > { %v2278_v62 = vadd.f32 %v2277_v61, %v1988_v59  ;;  %v1990_v63 = vpop.f32.mrb[49].mxu1  ;;  %v2279_v0 = vpop.f32.mrb[49].mxu0 }
 0x27c   : > { %v1991_v3 = vpop.f32.mrb[50].mxu1  ;;  %v2280_v5 = vpop.f32.mrb[50].mxu0 }
 0x27d   : > { %v2508_v6 = vadd.f32 %v2278_v62, %v1098_v60  ;;  %v2281_v7 = vadd.f32 %v2280_v5, %v1991_v3  ;;  %v1993_v8 = vpop.f32.mrb[51].mxu1  ;;  %v2282_v9 = vpop.f32.mrb[51].mxu0  ;;  %v1107_v60 = vld [vmem:[%s4810_s28 + $0x88] sm:$0xff] }
 0x27f   : > { %2572 = vst [vmem:[%s4810_s28 + $0x40] sm:$0xff] %v2508_v6  ;;  %v2509_v10 = vadd.f32 %v2281_v7, %v1099_v4  ;;  %2203 = vmatmul.mubr.bf16.gmra.mrb[156].mxu1 %v4493_v1  ;;  %2492 = vmatmul.mubr.bf16.gmra.mrb[156].mxu0 %v4494_v2  ;;  %v1108_v4 = vld [vmem:[%s4810_s28 + $0x90] sm:$0xff] }
 0x281   : > { %2573 = vst [vmem:[%s4810_s28 + $0x48] sm:$0xff] %v2509_v10  ;;  %v1109_v10 = vld [vmem:[%s4810_s28 + $0x98] sm:$0xff] }
 0x282   : > { %v1996_v11 = vpop.f32.mrb[52].mxu1  ;;  %v2285_v13 = vpop.f32.mrb[52].mxu0 }
 0x283   : > { %v2286_v35 = vadd.f32 %v2285_v13, %v1996_v11  ;;  %v1998_v14 = vpop.f32.mrb[53].mxu1  ;;  %v2287_v15 = vpop.f32.mrb[53].mxu0 }
 0x284   : > { %v1999_v16 = vpop.f32.mrb[54].mxu1  ;;  %v2288_v18 = vpop.f32.mrb[54].mxu0 }
 0x285   : > { %v2510_v19 = vadd.f32 %v2286_v35, %v1100_v12  ;;  %v2289_v20 = vadd.f32 %v2288_v18, %v1999_v16  ;;  %v2001_v21 = vpop.f32.mrb[55].mxu1  ;;  %v2290_v22 = vpop.f32.mrb[55].mxu0 }
 0x287   : > { %2574 = vst [vmem:[%s4810_s28 + $0x50] sm:$0xff] %v2510_v19  ;;  %v2511_v23 = vadd.f32 %v2289_v20, %v1101_v17  ;;  %v1110_v17 = vld [vmem:[%s4810_s28 + $0xa0] sm:$0xff] }
 0x289   : > { %2575 = vst [vmem:[%s4810_s28 + $0x58] sm:$0xff] %v2511_v23  ;;  %v1111_v23 = vld [vmem:[%s4810_s28 + $0xa8] sm:$0xff] }
 0x28a   : > { %v2004_v24 = vpop.f32.mrb[56].mxu1  ;;  %v2293_v26 = vpop.f32.mrb[56].mxu0 }
 0x28b   : > { %v2294_v27 = vadd.f32 %v2293_v26, %v2004_v24  ;;  %v2006_v28 = vpop.f32.mrb[57].mxu1  ;;  %v2295_v29 = vpop.f32.mrb[57].mxu0 }
 0x28c   : > { %v2007_v30 = vpop.f32.mrb[58].mxu1  ;;  %v2296_v32 = vpop.f32.mrb[58].mxu0 }
 0x28d   : > { %v2512_v33 = vadd.f32 %v2294_v27, %v1102_v25  ;;  %v2297_v34 = vadd.f32 %v2296_v32, %v2007_v30  ;;  %v2009_v36 = vpop.f32.mrb[59].mxu1  ;;  %v2298_v37 = vpop.f32.mrb[59].mxu0 }
 0x28f   : > { %2576 = vst [vmem:[%s4810_s28 + $0x60] sm:$0xff] %v2512_v33  ;;  %v2513_v38 = vadd.f32 %v2297_v34, %v1103_v31  ;;  %v1112_v31 = vld [vmem:[%s4810_s28 + $0xb0] sm:$0xff] }
 0x291   : > { %2577 = vst [vmem:[%s4810_s28 + $0x68] sm:$0xff] %v2513_v38  ;;  %v1113_v38 = vld [vmem:[%s4810_s28 + $0xb8] sm:$0xff] }
 0x292   : > { %v2012_v39 = vpop.f32.mrb[60].mxu1  ;;  %v2301_v41 = vpop.f32.mrb[60].mxu0 }
 0x293   : > { %v2302_v42 = vadd.f32 %v2301_v41, %v2012_v39  ;;  %v2014_v43 = vpop.f32.mrb[61].mxu1  ;;  %v2303_v44 = vpop.f32.mrb[61].mxu0 }
 0x294   : > { %v2015_v45 = vpop.f32.mrb[62].mxu1  ;;  %v2304_v47 = vpop.f32.mrb[62].mxu0 }
 0x295   : > { %v2514_v48 = vadd.f32 %v2302_v42, %v1104_v40  ;;  %v2305_v49 = vadd.f32 %v2304_v47, %v2015_v45  ;;  %v2017_v50 = vpop.f32.mrb[63].mxu1  ;;  %v2306_v51 = vpop.f32.mrb[63].mxu0 }
 0x297   : > { %2578 = vst [vmem:[%s4810_s28 + $0x70] sm:$0xff] %v2514_v48  ;;  %v2515_v52 = vadd.f32 %v2305_v49, %v1105_v46  ;;  %v1114_v46 = vld [vmem:[%s4810_s28 + $0xc0] sm:$0xff] }
 0x299   : > { %2579 = vst [vmem:[%s4810_s28 + $0x78] sm:$0xff] %v2515_v52  ;;  %v1115_v52 = vld [vmem:[%s4810_s28 + $0xc8] sm:$0xff] }
 0x29a   : > { %v2020_v53 = vpop.f32.mrb[64].mxu1  ;;  %v2309_v55 = vpop.f32.mrb[64].mxu0 }
 0x29b   : > { %v2310_v56 = vadd.f32 %v2309_v55, %v2020_v53  ;;  %v2022_v57 = vpop.f32.mrb[65].mxu1  ;;  %v2311_v58 = vpop.f32.mrb[65].mxu0 }
 0x29c   : > { %v2023_v59 = vpop.f32.mrb[66].mxu1  ;;  %v2312_v61 = vpop.f32.mrb[66].mxu0 }
 0x29d   : > { %v2516_v62 = vadd.f32 %v2310_v56, %v1106_v54  ;;  %v2313_v63 = vadd.f32 %v2312_v61, %v2023_v59  ;;  %v2025_v0 = vpop.f32.mrb[67].mxu1  ;;  %v2314_v1 = vpop.f32.mrb[67].mxu0 }
 0x29f   : > { %2580 = vst [vmem:[%s4810_s28 + $0x80] sm:$0xff] %v2516_v62  ;;  %v2517_v2 = vadd.f32 %v2313_v63, %v1107_v60  ;;  %v1116_v60 = vld [vmem:[%s4810_s28 + $0xd0] sm:$0xff] }
 0x2a1   : > { %2581 = vst [vmem:[%s4810_s28 + $0x88] sm:$0xff] %v2517_v2  ;;  %v1117_v2 = vld [vmem:[%s4810_s28 + $0xd8] sm:$0xff] }
 0x2a2   : > { %v2028_v3 = vpop.f32.mrb[68].mxu1  ;;  %v2317_v5 = vpop.f32.mrb[68].mxu0 }
 0x2a3   : > { %v2318_v6 = vadd.f32 %v2317_v5, %v2028_v3  ;;  %v2030_v7 = vpop.f32.mrb[69].mxu1  ;;  %v2319_v8 = vpop.f32.mrb[69].mxu0 }
 0x2a4   : > { %v2031_v9 = vpop.f32.mrb[70].mxu1  ;;  %v2320_v11 = vpop.f32.mrb[70].mxu0 }
 0x2a5   : > { %v2518_v12 = vadd.f32 %v2318_v6, %v1108_v4  ;;  %v2321_v13 = vadd.f32 %v2320_v11, %v2031_v9  ;;  %v2033_v35 = vpop.f32.mrb[71].mxu1  ;;  %v2322_v14 = vpop.f32.mrb[71].mxu0 }
 0x2a7   : > { %2582 = vst [vmem:[%s4810_s28 + $0x90] sm:$0xff] %v2518_v12  ;;  %v2519_v15 = vadd.f32 %v2321_v13, %v1109_v10  ;;  %v1118_v10 = vld [vmem:[%s4810_s28 + $0xe0] sm:$0xff] }
 0x2a9   : > { %2583 = vst [vmem:[%s4810_s28 + $0x98] sm:$0xff] %v2519_v15  ;;  %v1119_v15 = vld [vmem:[%s4810_s28 + $0xe8] sm:$0xff] }
 0x2aa   : > { %v2036_v16 = vpop.f32.mrb[72].mxu1  ;;  %v2325_v18 = vpop.f32.mrb[72].mxu0 }
 0x2ab   : > { %v2326_v19 = vadd.f32 %v2325_v18, %v2036_v16  ;;  %v2038_v20 = vpop.f32.mrb[73].mxu1  ;;  %v2327_v21 = vpop.f32.mrb[73].mxu0 }
 0x2ac   : > { %v2039_v22 = vpop.f32.mrb[74].mxu1  ;;  %v2328_v24 = vpop.f32.mrb[74].mxu0 }
 0x2ad   : > { %v2520_v25 = vadd.f32 %v2326_v19, %v1110_v17  ;;  %v2329_v26 = vadd.f32 %v2328_v24, %v2039_v22  ;;  %v2041_v27 = vpop.f32.mrb[75].mxu1  ;;  %v2330_v28 = vpop.f32.mrb[75].mxu0 }
 0x2af   : > { %2584 = vst [vmem:[%s4810_s28 + $0xa0] sm:$0xff] %v2520_v25  ;;  %v2521_v29 = vadd.f32 %v2329_v26, %v1111_v23  ;;  %v1120_v23 = vld [vmem:[%s4810_s28 + $0xf0] sm:$0xff] }
 0x2b1   : > { %2585 = vst [vmem:[%s4810_s28 + $0xa8] sm:$0xff] %v2521_v29  ;;  %v1121_v29 = vld [vmem:[%s4810_s28 + $0xf8] sm:$0xff] }
 0x2b2   : > { %v2044_v30 = vpop.f32.mrb[76].mxu1  ;;  %v2333_v32 = vpop.f32.mrb[76].mxu0 }
 0x2b3   : > { %v2334_v33 = vadd.f32 %v2333_v32, %v2044_v30  ;;  %v2046_v34 = vpop.f32.mrb[77].mxu1  ;;  %v2335_v36 = vpop.f32.mrb[77].mxu0 }
 0x2b4   : > { %v2047_v37 = vpop.f32.mrb[78].mxu1  ;;  %v2336_v39 = vpop.f32.mrb[78].mxu0 }
 0x2b5   : > { %v2522_v40 = vadd.f32 %v2334_v33, %v1112_v31  ;;  %v2337_v41 = vadd.f32 %v2336_v39, %v2047_v37  ;;  %v2049_v42 = vpop.f32.mrb[79].mxu1  ;;  %v2338_v43 = vpop.f32.mrb[79].mxu0 }
 0x2b7   : > { %2586 = vst [vmem:[%s4810_s28 + $0xb0] sm:$0xff] %v2522_v40  ;;  %v2523_v44 = vadd.f32 %v2337_v41, %v1113_v38  ;;  %v1122_v38 = vld [vmem:[%s4810_s28 + $0x100] sm:$0xff] }
 0x2b9   : > { %2587 = vst [vmem:[%s4810_s28 + $0xb8] sm:$0xff] %v2523_v44  ;;  %v1123_v44 = vld [vmem:[%s4810_s28 + $0x108] sm:$0xff] }
 0x2ba   : > { %v2052_v45 = vpop.f32.mrb[80].mxu1  ;;  %v2341_v47 = vpop.f32.mrb[80].mxu0 }
 0x2bb   : > { %v2342_v48 = vadd.f32 %v2341_v47, %v2052_v45  ;;  %v2054_v49 = vpop.f32.mrb[81].mxu1  ;;  %v2343_v50 = vpop.f32.mrb[81].mxu0 }
 0x2bc   : > { %v2055_v51 = vpop.f32.mrb[82].mxu1  ;;  %v2344_v53 = vpop.f32.mrb[82].mxu0 }
 0x2bd   : > { %v2524_v54 = vadd.f32 %v2342_v48, %v1114_v46  ;;  %v2345_v55 = vadd.f32 %v2344_v53, %v2055_v51  ;;  %v2057_v56 = vpop.f32.mrb[83].mxu1  ;;  %v2346_v57 = vpop.f32.mrb[83].mxu0 }
 0x2bf   : > { %2588 = vst [vmem:[%s4810_s28 + $0xc0] sm:$0xff] %v2524_v54  ;;  %v2525_v58 = vadd.f32 %v2345_v55, %v1115_v52  ;;  %v1124_v52 = vld [vmem:[%s4810_s28 + $0x110] sm:$0xff] }
 0x2c1   : > { %2589 = vst [vmem:[%s4810_s28 + $0xc8] sm:$0xff] %v2525_v58  ;;  %v1125_v58 = vld [vmem:[%s4810_s28 + $0x118] sm:$0xff] }
 0x2c2   : > { %v2060_v59 = vpop.f32.mrb[84].mxu1  ;;  %v2349_v61 = vpop.f32.mrb[84].mxu0 }
 0x2c3   : > { %v2350_v62 = vadd.f32 %v2349_v61, %v2060_v59  ;;  %v2062_v63 = vpop.f32.mrb[85].mxu1  ;;  %v2351_v0 = vpop.f32.mrb[85].mxu0 }
 0x2c4   : > { %v2063_v1 = vpop.f32.mrb[86].mxu1  ;;  %v2352_v3 = vpop.f32.mrb[86].mxu0 }
 0x2c5   : > { %v2526_v4 = vadd.f32 %v2350_v62, %v1116_v60  ;;  %v2353_v5 = vadd.f32 %v2352_v3, %v2063_v1  ;;  %v2065_v6 = vpop.f32.mrb[87].mxu1  ;;  %v2354_v7 = vpop.f32.mrb[87].mxu0 }
 0x2c7   : > { %2590 = vst [vmem:[%s4810_s28 + $0xd0] sm:$0xff] %v2526_v4  ;;  %v2527_v8 = vadd.f32 %v2353_v5, %v1117_v2  ;;  %v1126_v2 = vld [vmem:[%s4810_s28 + $0x120] sm:$0xff] }
 0x2c9   : > { %2591 = vst [vmem:[%s4810_s28 + $0xd8] sm:$0xff] %v2527_v8  ;;  %v1127_v8 = vld [vmem:[%s4810_s28 + $0x128] sm:$0xff] }
 0x2ca   : > { %v2068_v9 = vpop.f32.mrb[88].mxu1  ;;  %v2357_v11 = vpop.f32.mrb[88].mxu0 }
 0x2cb   : > { %v2358_v12 = vadd.f32 %v2357_v11, %v2068_v9  ;;  %v2070_v13 = vpop.f32.mrb[89].mxu1  ;;  %v2359_v35 = vpop.f32.mrb[89].mxu0 }
 0x2cc   : > { %v2071_v14 = vpop.f32.mrb[90].mxu1  ;;  %v2360_v16 = vpop.f32.mrb[90].mxu0 }
 0x2cd   : > { %v2528_v17 = vadd.f32 %v2358_v12, %v1118_v10  ;;  %v2361_v18 = vadd.f32 %v2360_v16, %v2071_v14  ;;  %v2073_v19 = vpop.f32.mrb[91].mxu1  ;;  %v2362_v20 = vpop.f32.mrb[91].mxu0 }
 0x2cf   : > { %2592 = vst [vmem:[%s4810_s28 + $0xe0] sm:$0xff] %v2528_v17  ;;  %v2529_v21 = vadd.f32 %v2361_v18, %v1119_v15  ;;  %v1128_v15 = vld [vmem:[%s4810_s28 + $0x130] sm:$0xff] }
 0x2d1   : > { %2593 = vst [vmem:[%s4810_s28 + $0xe8] sm:$0xff] %v2529_v21  ;;  %v1129_v21 = vld [vmem:[%s4810_s28 + $0x138] sm:$0xff] }
 0x2d2   : > { %v2076_v22 = vpop.f32.mrb[92].mxu1  ;;  %v2365_v24 = vpop.f32.mrb[92].mxu0 }
 0x2d3   : > { %v2366_v25 = vadd.f32 %v2365_v24, %v2076_v22  ;;  %v2078_v26 = vpop.f32.mrb[93].mxu1  ;;  %v2367_v27 = vpop.f32.mrb[93].mxu0 }
 0x2d4   : > { %v2079_v28 = vpop.f32.mrb[94].mxu1  ;;  %v2368_v30 = vpop.f32.mrb[94].mxu0 }
 0x2d5   : > { %v2530_v31 = vadd.f32 %v2366_v25, %v1120_v23  ;;  %v2369_v32 = vadd.f32 %v2368_v30, %v2079_v28  ;;  %v2081_v33 = vpop.f32.mrb[95].mxu1  ;;  %v2370_v34 = vpop.f32.mrb[95].mxu0 }
 0x2d7   : > { %2594 = vst [vmem:[%s4810_s28 + $0xf0] sm:$0xff] %v2530_v31  ;;  %v2531_v36 = vadd.f32 %v2369_v32, %v1121_v29  ;;  %v1130_v29 = vld [vmem:[%s4810_s28 + $0x140] sm:$0xff] }
 0x2d9   : > { %2595 = vst [vmem:[%s4810_s28 + $0xf8] sm:$0xff] %v2531_v36  ;;  %v1131_v36 = vld [vmem:[%s4810_s28 + $0x148] sm:$0xff] }
 0x2da   : > { %v2084_v37 = vpop.f32.mrb[96].mxu1  ;;  %v2373_v39 = vpop.f32.mrb[96].mxu0 }
 0x2db   : > { %v2374_v40 = vadd.f32 %v2373_v39, %v2084_v37  ;;  %v2086_v41 = vpop.f32.mrb[97].mxu1  ;;  %v2375_v42 = vpop.f32.mrb[97].mxu0 }
 0x2dc   : > { %v2087_v43 = vpop.f32.mrb[98].mxu1  ;;  %v2376_v45 = vpop.f32.mrb[98].mxu0 }
 0x2dd   : > { %v2532_v46 = vadd.f32 %v2374_v40, %v1122_v38  ;;  %v2377_v47 = vadd.f32 %v2376_v45, %v2087_v43  ;;  %v2089_v48 = vpop.f32.mrb[99].mxu1  ;;  %v2378_v49 = vpop.f32.mrb[99].mxu0 }
 0x2df   : > { %2596 = vst [vmem:[%s4810_s28 + $0x100] sm:$0xff] %v2532_v46  ;;  %v2533_v50 = vadd.f32 %v2377_v47, %v1123_v44  ;;  %v1132_v44 = vld [vmem:[%s4810_s28 + $0x150] sm:$0xff] }
 0x2e1   : > { %2597 = vst [vmem:[%s4810_s28 + $0x108] sm:$0xff] %v2533_v50  ;;  %v1133_v50 = vld [vmem:[%s4810_s28 + $0x158] sm:$0xff] }
 0x2e2   : > { %v2092_v51 = vpop.f32.mrb[100].mxu1  ;;  %v2381_v53 = vpop.f32.mrb[100].mxu0 }
 0x2e3   : > { %v2382_v54 = vadd.f32 %v2381_v53, %v2092_v51  ;;  %v2094_v55 = vpop.f32.mrb[101].mxu1  ;;  %v2383_v56 = vpop.f32.mrb[101].mxu0 }
 0x2e4   : > { %v2095_v57 = vpop.f32.mrb[102].mxu1  ;;  %v2384_v59 = vpop.f32.mrb[102].mxu0 }
 0x2e5   : > { %v2534_v60 = vadd.f32 %v2382_v54, %v1124_v52  ;;  %v2385_v61 = vadd.f32 %v2384_v59, %v2095_v57  ;;  %v2097_v62 = vpop.f32.mrb[103].mxu1  ;;  %v2386_v63 = vpop.f32.mrb[103].mxu0 }
 0x2e7   : > { %2598 = vst [vmem:[%s4810_s28 + $0x110] sm:$0xff] %v2534_v60  ;;  %v2535_v0 = vadd.f32 %v2385_v61, %v1125_v58  ;;  %v1134_v58 = vld [vmem:[%s4810_s28 + $0x160] sm:$0xff] }
 0x2e9   : > { %2599 = vst [vmem:[%s4810_s28 + $0x118] sm:$0xff] %v2535_v0  ;;  %v1135_v0 = vld [vmem:[%s4810_s28 + $0x168] sm:$0xff] }
 0x2ea   : > { %v2100_v1 = vpop.f32.mrb[104].mxu1  ;;  %v2389_v3 = vpop.f32.mrb[104].mxu0 }
 0x2eb   : > { %v2390_v4 = vadd.f32 %v2389_v3, %v2100_v1  ;;  %v2102_v5 = vpop.f32.mrb[105].mxu1  ;;  %v2391_v6 = vpop.f32.mrb[105].mxu0 }
 0x2ec   : > { %v2103_v7 = vpop.f32.mrb[106].mxu1  ;;  %v2392_v9 = vpop.f32.mrb[106].mxu0 }
 0x2ed   : > { %v2536_v10 = vadd.f32 %v2390_v4, %v1126_v2  ;;  %v2393_v11 = vadd.f32 %v2392_v9, %v2103_v7  ;;  %v2105_v12 = vpop.f32.mrb[107].mxu1  ;;  %v2394_v13 = vpop.f32.mrb[107].mxu0 }
 0x2ef   : > { %2600 = vst [vmem:[%s4810_s28 + $0x120] sm:$0xff] %v2536_v10  ;;  %v2537_v35 = vadd.f32 %v2393_v11, %v1127_v8  ;;  %v1136_v8 = vld [vmem:[%s4810_s28 + $0x170] sm:$0xff] }
 0x2f1   : > { %2601 = vst [vmem:[%s4810_s28 + $0x128] sm:$0xff] %v2537_v35  ;;  %v1137_v35 = vld [vmem:[%s4810_s28 + $0x178] sm:$0xff] }
 0x2f2   : > { %v2108_v14 = vpop.f32.mrb[108].mxu1  ;;  %v2397_v16 = vpop.f32.mrb[108].mxu0 }
 0x2f3   : > { %v2398_v17 = vadd.f32 %v2397_v16, %v2108_v14  ;;  %v2110_v18 = vpop.f32.mrb[109].mxu1  ;;  %v2399_v19 = vpop.f32.mrb[109].mxu0 }
 0x2f4   : > { %v2111_v20 = vpop.f32.mrb[110].mxu1  ;;  %v2400_v22 = vpop.f32.mrb[110].mxu0 }
 0x2f5   : > { %v2538_v23 = vadd.f32 %v2398_v17, %v1128_v15  ;;  %v2401_v24 = vadd.f32 %v2400_v22, %v2111_v20  ;;  %v2113_v25 = vpop.f32.mrb[111].mxu1  ;;  %v2402_v26 = vpop.f32.mrb[111].mxu0 }
 0x2f7   : > { %2602 = vst [vmem:[%s4810_s28 + $0x130] sm:$0xff] %v2538_v23  ;;  %v2539_v27 = vadd.f32 %v2401_v24, %v1129_v21  ;;  %v1138_v21 = vld [vmem:[%s4810_s28 + $0x180] sm:$0xff] }
 0x2f9   : > { %2603 = vst [vmem:[%s4810_s28 + $0x138] sm:$0xff] %v2539_v27  ;;  %v1139_v27 = vld [vmem:[%s4810_s28 + $0x188] sm:$0xff] }
 0x2fa   : > { %v2116_v28 = vpop.f32.mrb[112].mxu1  ;;  %v2405_v30 = vpop.f32.mrb[112].mxu0 }
 0x2fb   : > { %v2406_v31 = vadd.f32 %v2405_v30, %v2116_v28  ;;  %v2118_v32 = vpop.f32.mrb[113].mxu1  ;;  %v2407_v33 = vpop.f32.mrb[113].mxu0 }
 0x2fc   : > { %v2119_v34 = vpop.f32.mrb[114].mxu1  ;;  %v2408_v37 = vpop.f32.mrb[114].mxu0 }
 0x2fd   : > { %v2540_v38 = vadd.f32 %v2406_v31, %v1130_v29  ;;  %v2409_v39 = vadd.f32 %v2408_v37, %v2119_v34  ;;  %v2121_v40 = vpop.f32.mrb[115].mxu1  ;;  %v2410_v41 = vpop.f32.mrb[115].mxu0 }
 0x2ff   : > { %2604 = vst [vmem:[%s4810_s28 + $0x140] sm:$0xff] %v2540_v38  ;;  %v2541_v42 = vadd.f32 %v2409_v39, %v1131_v36  ;;  %v1140_v36 = vld [vmem:[%s4810_s28 + $0x190] sm:$0xff] }
 0x301   : > { %2605 = vst [vmem:[%s4810_s28 + $0x148] sm:$0xff] %v2541_v42  ;;  %v1141_v42 = vld [vmem:[%s4810_s28 + $0x198] sm:$0xff] }
 0x302   : > { %v2124_v43 = vpop.f32.mrb[116].mxu1  ;;  %v2413_v45 = vpop.f32.mrb[116].mxu0 }
 0x303   : > { %v2414_v46 = vadd.f32 %v2413_v45, %v2124_v43  ;;  %v2126_v47 = vpop.f32.mrb[117].mxu1  ;;  %v2415_v48 = vpop.f32.mrb[117].mxu0 }
 0x304   : > { %v2127_v49 = vpop.f32.mrb[118].mxu1  ;;  %v2416_v51 = vpop.f32.mrb[118].mxu0 }
 0x305   : > { %v2542_v52 = vadd.f32 %v2414_v46, %v1132_v44  ;;  %v2417_v53 = vadd.f32 %v2416_v51, %v2127_v49  ;;  %v2129_v54 = vpop.f32.mrb[119].mxu1  ;;  %v2418_v55 = vpop.f32.mrb[119].mxu0 }
 0x307   : > { %2606 = vst [vmem:[%s4810_s28 + $0x150] sm:$0xff] %v2542_v52  ;;  %v2543_v56 = vadd.f32 %v2417_v53, %v1133_v50  ;;  %v1142_v50 = vld [vmem:[%s4810_s28 + $0x1a0] sm:$0xff] }
 0x309   : > { %2607 = vst [vmem:[%s4810_s28 + $0x158] sm:$0xff] %v2543_v56  ;;  %v1143_v56 = vld [vmem:[%s4810_s28 + $0x1a8] sm:$0xff] }
 0x30a   : > { %v2132_v57 = vpop.f32.mrb[120].mxu1  ;;  %v2421_v59 = vpop.f32.mrb[120].mxu0 }
 0x30b   : > { %v2422_v60 = vadd.f32 %v2421_v59, %v2132_v57  ;;  %v2134_v61 = vpop.f32.mrb[121].mxu1  ;;  %v2423_v62 = vpop.f32.mrb[121].mxu0 }
 0x30c   : > { %v2135_v63 = vpop.f32.mrb[122].mxu1  ;;  %v2424_v1 = vpop.f32.mrb[122].mxu0 }
 0x30d   : > { %v2544_v2 = vadd.f32 %v2422_v60, %v1134_v58  ;;  %v2425_v3 = vadd.f32 %v2424_v1, %v2135_v63  ;;  %v2137_v4 = vpop.f32.mrb[123].mxu1  ;;  %v2426_v5 = vpop.f32.mrb[123].mxu0 }
 0x30f   : > { %2608 = vst [vmem:[%s4810_s28 + $0x160] sm:$0xff] %v2544_v2  ;;  %v2545_v6 = vadd.f32 %v2425_v3, %v1135_v0  ;;  %v1144_v0 = vld [vmem:[%s4810_s28 + $0x1b0] sm:$0xff] }
 0x311   : > { %2609 = vst [vmem:[%s4810_s28 + $0x168] sm:$0xff] %v2545_v6  ;;  %v1145_v6 = vld [vmem:[%s4810_s28 + $0x1b8] sm:$0xff] }
 0x312   : > { %v2140_v7 = vpop.f32.mrb[124].mxu1  ;;  %v2429_v9 = vpop.f32.mrb[124].mxu0 }
 0x313   : > { %v2430_v10 = vadd.f32 %v2429_v9, %v2140_v7  ;;  %v2142_v11 = vpop.f32.mrb[125].mxu1  ;;  %v2431_v12 = vpop.f32.mrb[125].mxu0 }
 0x314   : > { %v2143_v13 = vpop.f32.mrb[126].mxu1  ;;  %v2432_v14 = vpop.f32.mrb[126].mxu0 }
 0x315   : > { %v2546_v15 = vadd.f32 %v2430_v10, %v1136_v8  ;;  %v2433_v16 = vadd.f32 %v2432_v14, %v2143_v13  ;;  %v2145_v17 = vpop.f32.mrb[127].mxu1  ;;  %v2434_v18 = vpop.f32.mrb[127].mxu0 }
 0x317   : > { %2610 = vst [vmem:[%s4810_s28 + $0x170] sm:$0xff] %v2546_v15  ;;  %v2547_v19 = vadd.f32 %v2433_v16, %v1137_v35  ;;  %v1146_v35 = vld [vmem:[%s4810_s28 + $0x1c0] sm:$0xff] }
 0x319   : > { %2611 = vst [vmem:[%s4810_s28 + $0x178] sm:$0xff] %v2547_v19  ;;  %v1147_v19 = vld [vmem:[%s4810_s28 + $0x1c8] sm:$0xff] }
 0x31a   : > { %v2148_v20 = vpop.f32.mrb[128].mxu1  ;;  %v2437_v22 = vpop.f32.mrb[128].mxu0 }
 0x31b   : > { %v2438_v23 = vadd.f32 %v2437_v22, %v2148_v20  ;;  %v2150_v24 = vpop.f32.mrb[129].mxu1  ;;  %v2439_v25 = vpop.f32.mrb[129].mxu0 }
 0x31c   : > { %v2151_v26 = vpop.f32.mrb[130].mxu1  ;;  %v2440_v28 = vpop.f32.mrb[130].mxu0 }
 0x31d   : > { %v2548_v29 = vadd.f32 %v2438_v23, %v1138_v21  ;;  %v2441_v30 = vadd.f32 %v2440_v28, %v2151_v26  ;;  %v2153_v31 = vpop.f32.mrb[131].mxu1  ;;  %v2442_v32 = vpop.f32.mrb[131].mxu0 }
 0x31f   : > { %2612 = vst [vmem:[%s4810_s28 + $0x180] sm:$0xff] %v2548_v29  ;;  %v2549_v33 = vadd.f32 %v2441_v30, %v1139_v27  ;;  %v1148_v27 = vld [vmem:[%s4810_s28 + $0x1d0] sm:$0xff] }
 0x321   : > { %2613 = vst [vmem:[%s4810_s28 + $0x188] sm:$0xff] %v2549_v33  ;;  %v1149_v33 = vld [vmem:[%s4810_s28 + $0x1d8] sm:$0xff] }
 0x322   : > { %v2156_v34 = vpop.f32.mrb[132].mxu1  ;;  %v2445_v37 = vpop.f32.mrb[132].mxu0 }
 0x323   : > { %v2446_v38 = vadd.f32 %v2445_v37, %v2156_v34  ;;  %v2158_v39 = vpop.f32.mrb[133].mxu1  ;;  %v2447_v40 = vpop.f32.mrb[133].mxu0 }
 0x324   : > { %v2159_v41 = vpop.f32.mrb[134].mxu1  ;;  %v2448_v43 = vpop.f32.mrb[134].mxu0 }
 0x325   : > { %v2550_v44 = vadd.f32 %v2446_v38, %v1140_v36  ;;  %v2449_v45 = vadd.f32 %v2448_v43, %v2159_v41  ;;  %v2161_v46 = vpop.f32.mrb[135].mxu1  ;;  %v2450_v47 = vpop.f32.mrb[135].mxu0 }
 0x327   : > { %2614 = vst [vmem:[%s4810_s28 + $0x190] sm:$0xff] %v2550_v44  ;;  %v2551_v48 = vadd.f32 %v2449_v45, %v1141_v42  ;;  %v1150_v42 = vld [vmem:[%s4810_s28 + $0x1e0] sm:$0xff] }
 0x329   : > { %2615 = vst [vmem:[%s4810_s28 + $0x198] sm:$0xff] %v2551_v48  ;;  %v1151_v48 = vld [vmem:[%s4810_s28 + $0x1e8] sm:$0xff] }
 0x32a   : > { %v2164_v49 = vpop.f32.mrb[136].mxu1  ;;  %v2453_v51 = vpop.f32.mrb[136].mxu0 }
 0x32b   : > { %v2454_v52 = vadd.f32 %v2453_v51, %v2164_v49  ;;  %v2166_v53 = vpop.f32.mrb[137].mxu1  ;;  %v2455_v54 = vpop.f32.mrb[137].mxu0 }
 0x32c   : > { %v2167_v55 = vpop.f32.mrb[138].mxu1  ;;  %v2456_v57 = vpop.f32.mrb[138].mxu0 }
 0x32d   : > { %v2552_v58 = vadd.f32 %v2454_v52, %v1142_v50  ;;  %v2457_v59 = vadd.f32 %v2456_v57, %v2167_v55  ;;  %v2169_v60 = vpop.f32.mrb[139].mxu1  ;;  %v2458_v61 = vpop.f32.mrb[139].mxu0 }
 0x32f   : > { %2616 = vst [vmem:[%s4810_s28 + $0x1a0] sm:$0xff] %v2552_v58  ;;  %v2553_v62 = vadd.f32 %v2457_v59, %v1143_v56  ;;  %v1152_v56 = vld [vmem:[%s4810_s28 + $0x1f0] sm:$0xff] }
 0x331   : > { %2617 = vst [vmem:[%s4810_s28 + $0x1a8] sm:$0xff] %v2553_v62  ;;  %v1153_v62 = vld [vmem:[%s4810_s28 + $0x1f8] sm:$0xff] }
 0x332   : > { %v2172_v63 = vpop.f32.mrb[140].mxu1  ;;  %v2461_v1 = vpop.f32.mrb[140].mxu0 }
 0x333   : > { %v2462_v2 = vadd.f32 %v2461_v1, %v2172_v63  ;;  %v2174_v3 = vpop.f32.mrb[141].mxu1  ;;  %v2463_v4 = vpop.f32.mrb[141].mxu0 }
 0x334   : > { %v2175_v5 = vpop.f32.mrb[142].mxu1  ;;  %v2464_v7 = vpop.f32.mrb[142].mxu0 }
 0x335   : > { %v2554_v8 = vadd.f32 %v2462_v2, %v1144_v0  ;;  %v2465_v9 = vadd.f32 %v2464_v7, %v2175_v5  ;;  %v2177_v10 = vpop.f32.mrb[143].mxu1  ;;  %v2466_v11 = vpop.f32.mrb[143].mxu0  ;;  %v4495_v5 = vld [vmem:[%s5821_s9] sm:$0xff] (!%p3909_p6)  }
 0x336   : > { %4117 = vmatprep.subr.bf16.mxu0 (!%p3909_p6), %v4495_v5  ;;  %4189 = vmatprep.subr.bf16.mxu1 (!%p3909_p6), %v4495_v5  ;;  %v4497_v7 = vld [vmem:[%s4805_s15] sm:$0xff] (!%p3909_p6)   ;;  %v4500_v10 = vld [vmem:[%s4805_s15 + $0x88] sm:$0xff] (!%p3909_p6)   ;;  %v4501_v11 = vld [vmem:[%s4805_s15 + $0x10] sm:$0xff] (!%p3909_p6)  }
 0x337   : > { %2618 = vst [vmem:[%s4810_s28 + $0x1b0] sm:$0xff] %v2554_v8  ;;  %v2555_v12 = vadd.f32 %v2465_v9, %v1145_v6  ;;  %v4496_v6 = vld [vmem:[%s5821_s9 + $0x8] sm:$0xff] (!%p3909_p6)   ;;  %4118 = vmatpush3.bf16.msra.mxu0 (!%p3909_p6), %v4495_v5  ;;  %4191 = vmatpush3.bf16.msra.mxu1 (!%p3909_p6), %v4495_v5  ;;  %v4498_v8 = vld [vmem:[%s4805_s15 + $0x80] sm:$0xff] (!%p3909_p6)  }
 0x338   : > { %4119 = vmatprep.subr.bf16.mxu0 (!%p3909_p6), %v4496_v6  ;;  %4190 = vmatprep.subr.bf16.mxu1 (!%p3909_p6), %v4496_v6  ;;  %v4499_v9 = vld [vmem:[%s4805_s15 + $0x8] sm:$0xff] (!%p3909_p6)  }
 0x339   : > { %2619 = vst [vmem:[%s4810_s28 + $0x1b8] sm:$0xff] %v2555_v12  ;;  %4121 = vmatprep.mubr.msk.bf16.mxu0 (!%p3909_p6), %vm672_vm0, %v4497_v7  ;;  %4153 = vmatprep.mubr.msk.bf16.mxu1 (!%p3909_p6), %vm672_vm0, %v4498_v8  ;;  %v4502_v12 = vld [vmem:[%s4805_s15 + $0x90] sm:$0xff] (!%p3909_p6)   ;;  %v2637_v7 = vld [vmem:[%s4810_s28 + $0x28] sm:$0xff] (!%p3909_p6) }
 0x33a   : > { %v2180_v13 = vpop.f32.mrb[144].mxu1  ;;  %v2469_v14 = vpop.f32.mrb[144].mxu0  ;;  %v2669_v8 = vld [vmem:[%s4810_s28 + $0x128] sm:$0xff] (!%p3909_p6) }
 0x33b   : > { %v2470_v15 = vadd.f32 %v2469_v14, %v2180_v13  ;;  %v2182_v16 = vpop.f32.mrb[145].mxu1  ;;  %v2471_v17 = vpop.f32.mrb[145].mxu0  ;;  %4120 = vmatpush3.bf16.msra.mxu0 (!%p3909_p6), %v4496_v6  ;;  %4192 = vmatpush3.bf16.msra.mxu1 (!%p3909_p6), %v4496_v6  ;;  %v4503_v13 = vld [vmem:[%s4805_s15 + $0x18] sm:$0xff] (!%p3909_p6)   ;;  %v4505_v14 = vld [vmem:[%s4805_s15 + $0x20] sm:$0xff] (!%p3909_p6)  }
 0x33c   : > { %v2183_v18 = vpop.f32.mrb[146].mxu1  ;;  %v2472_v20 = vpop.f32.mrb[146].mxu0  ;;  %v4507_v16 = vld [vmem:[%s4805_s15 + $0x28] sm:$0xff] (!%p3909_p6)  }
 0x33d   : > { %v2556_v21 = vadd.f32 %v2470_v15, %v1146_v35  ;;  %v2473_v22 = vadd.f32 %v2472_v20, %v2183_v18  ;;  %v2185_v23 = vpop.f32.mrb[147].mxu1  ;;  %v2474_v24 = vpop.f32.mrb[147].mxu0  ;;  %v4504_v35 = vld [vmem:[%s4805_s15 + $0x98] sm:$0xff] (!%p3909_p6)   ;;  %v4506_v15 = vld [vmem:[%s4805_s15 + $0xa0] sm:$0xff] (!%p3909_p6)   ;;  %v4508_v17 = vld [vmem:[%s4805_s15 + $0xa8] sm:$0xff] (!%p3909_p6)  }
 0x33e   : > { %4122 = vmatmul.mubr.msk.bf16.vlgmr.msra.gmra.mrb[0].mxu0 (!%p3909_p6), %vm672_vm0, %v4499_v9  ;;  %4154 = vmatmul.mubr.msk.bf16.vlgmr.msra.gmra.mrb[0].mxu1 (!%p3909_p6), %vm672_vm0, %v4500_v10  ;;  %v4509_v18 = vld [vmem:[%s4805_s15 + $0x30] sm:$0xff] (!%p3909_p6)   ;;  %v4511_v20 = vld [vmem:[%s4805_s15 + $0x38] sm:$0xff] (!%p3909_p6)   ;;  %v4514_v23 = vld [vmem:[%s4805_s15 + $0xc0] sm:$0xff] (!%p3909_p6)  }
 0x33f   : > { %2620 = vst [vmem:[%s4810_s28 + $0x1c0] sm:$0xff] %v2556_v21  ;;  %v2557_v25 = vadd.f32 %v2473_v22, %v1147_v19  ;;  %4125 = vmatprep.mubr.msk.bf16.mxu0 (!%p3909_p6), %vm672_vm0, %v4501_v11  ;;  %4157 = vmatprep.mubr.msk.bf16.mxu1 (!%p3909_p6), %vm672_vm0, %v4502_v12  ;;  %v4510_v19 = vld [vmem:[%s4805_s15 + $0xb0] sm:$0xff] (!%p3909_p6)   ;;  %v4512_v21 = vld [vmem:[%s4805_s15 + $0xb8] sm:$0xff] (!%p3909_p6)   ;;  %v4513_v22 = vld [vmem:[%s4805_s15 + $0x40] sm:$0xff] (!%p3909_p6)  }
 0x340   : > { %v4515_v24 = vld [vmem:[%s4805_s15 + $0x48] sm:$0xff] (!%p3909_p6)  }
 0x341   : > { %2621 = vst [vmem:[%s4810_s28 + $0x1c8] sm:$0xff] %v2557_v25  ;;  %v4516_v25 = vld [vmem:[%s4805_s15 + $0xc8] sm:$0xff] (!%p3909_p6)  }
 0x342   : > { %v2188_v26 = vpop.f32.mrb[148].mxu1  ;;  %v2477_v28 = vpop.f32.mrb[148].mxu0 }
 0x343   : > { %v2478_v29 = vadd.f32 %v2477_v28, %v2188_v26  ;;  %v2190_v30 = vpop.f32.mrb[149].mxu1  ;;  %v2479_v31 = vpop.f32.mrb[149].mxu0  ;;  %v4517_v26 = vld [vmem:[%s4805_s15 + $0x50] sm:$0xff] (!%p3909_p6)   ;;  %v4519_v28 = vld [vmem:[%s4805_s15 + $0x58] sm:$0xff] (!%p3909_p6)  }
 0x344   : > { %v2191_v32 = vpop.f32.mrb[150].mxu1  ;;  %v2480_v34 = vpop.f32.mrb[150].mxu0  ;;  %v4521_v30 = vld [vmem:[%s4805_s15 + $0x60] sm:$0xff] (!%p3909_p6)  }
 0x345   : > { %v2558_v36 = vadd.f32 %v2478_v29, %v1148_v27  ;;  %v2481_v37 = vadd.f32 %v2480_v34, %v2191_v32  ;;  %v2193_v38 = vpop.f32.mrb[151].mxu1  ;;  %v2482_v39 = vpop.f32.mrb[151].mxu0  ;;  %v4518_v27 = vld [vmem:[%s4805_s15 + $0xd0] sm:$0xff] (!%p3909_p6)   ;;  %v4520_v29 = vld [vmem:[%s4805_s15 + $0xd8] sm:$0xff] (!%p3909_p6)   ;;  %v4522_v31 = vld [vmem:[%s4805_s15 + $0xe0] sm:$0xff] (!%p3909_p6)  }
 0x346   : > { %4126 = vmatmul.mubr.msk.bf16.gmra.mrb[4].mxu0 (!%p3909_p6), %vm672_vm0, %v4503_v13  ;;  %4158 = vmatmul.mubr.msk.bf16.gmra.mrb[4].mxu1 (!%p3909_p6), %vm672_vm0, %v4504_v35  ;;  %v4523_v32 = vld [vmem:[%s4805_s15 + $0x68] sm:$0xff] (!%p3909_p6)   ;;  %v4525_v34 = vld [vmem:[%s4805_s15 + $0x70] sm:$0xff] (!%p3909_p6)   ;;  %v4528_v38 = vld [vmem:[%s4805_s15 + $0xf8] sm:$0xff] (!%p3909_p6)  }
 0x347   : > { %2622 = vst [vmem:[%s4810_s28 + $0x1d0] sm:$0xff] %v2558_v36  ;;  %v2559_v40 = vadd.f32 %v2481_v37, %v1149_v33  ;;  %4129 = vmatprep.mubr.msk.bf16.mxu0 (!%p3909_p6), %vm672_vm0, %v4505_v14  ;;  %4161 = vmatprep.mubr.msk.bf16.mxu1 (!%p3909_p6), %vm672_vm0, %v4506_v15  ;;  %v4524_v33 = vld [vmem:[%s4805_s15 + $0xe8] sm:$0xff] (!%p3909_p6)   ;;  %v4526_v36 = vld [vmem:[%s4805_s15 + $0xf0] sm:$0xff] (!%p3909_p6)   ;;  %v4527_v37 = vld [vmem:[%s4805_s15 + $0x78] sm:$0xff] (!%p3909_p6)   ;;  %s5823_s15 = sld [smem:[#allocation8_spill]] (!%p3909_p6) }
 0x348   : > { %v2634_v39 = vld [vmem:[%s4810_s28 + $0x10] sm:$0xff] (!%p3909_p6) }
 0x349   : > { %2623 = vst [vmem:[%s4810_s28 + $0x1d8] sm:$0xff] %v2559_v40  ;;  %v5374_v40 = vld [vmem:[%s5822_s19] ss:$0 sm:$0xff] (!%p3909_p6) }
 0x34a   : > { %v2196_v41 = vpop.f32.mrb[152].mxu1  ;;  %v2485_v43 = vpop.f32.mrb[152].mxu0 }
 0x34b   : > { %v2486_v44 = vadd.f32 %v2485_v43, %v2196_v41  ;;  %v2198_v45 = vpop.f32.mrb[153].mxu1  ;;  %v2487_v46 = vpop.f32.mrb[153].mxu0  ;;  %v2666_v41 = vld [vmem:[%s4810_s28 + $0x110] sm:$0xff] (!%p3909_p6)  ;;  %v2664_v43 = vld [vmem:[%s4810_s28 + $0x100] sm:$0xff] (!%p3909_p6) }
 0x34c   : > { %v2199_v47 = vpop.f32.mrb[154].mxu1  ;;  %v2488_v49 = vpop.f32.mrb[154].mxu0  ;;  %v2667_v45 = vld [vmem:[%s4810_s28 + $0x118] sm:$0xff] (!%p3909_p6)  ;;  %v2633_v46 = vld [vmem:[%s4810_s28 + $0x8] sm:$0xff] (!%p3909_p6) }
 0x34d   : > { %v2560_v50 = vadd.f32 %v2486_v44, %v1150_v42  ;;  %v2489_v51 = vadd.f32 %v2488_v49, %v2199_v47  ;;  %v2201_v52 = vpop.f32.mrb[155].mxu1  ;;  %v2490_v53 = vpop.f32.mrb[155].mxu0  ;;  %v2632_v42 = vld [vmem:[%s4810_s28] sm:$0xff] (!%p3909_p6)  ;;  %v2635_v44 = vld [vmem:[%s4810_s28 + $0x18] sm:$0xff] (!%p3909_p6)  ;;  %v2665_v47 = vld [vmem:[%s4810_s28 + $0x108] sm:$0xff] (!%p3909_p6)  ;;  %v2737_v49 = vadd.f32 (!%p3909_p6), %v5374_v40, %v2666_v41 }
 0x34e   : > { %4130 = vmatmul.mubr.msk.bf16.gmra.mrb[8].mxu0 (!%p3909_p6), %vm672_vm0, %v4507_v16  ;;  %4162 = vmatmul.mubr.msk.bf16.gmra.mrb[8].mxu1 (!%p3909_p6), %vm672_vm0, %v4508_v17  ;;  %v2706_v52 = vadd.f32 (!%p3909_p6), %v5374_v40, %v2635_v44  ;;  %v2738_v53 = vadd.f32 (!%p3909_p6), %v5374_v40, %v2667_v45  ;;  %v2640_v44 = vld [vmem:[%s4810_s28 + $0x40] sm:$0xff] (!%p3909_p6) }
 0x34f   : > { %2624 = vst [vmem:[%s4810_s28 + $0x1e0] sm:$0xff] %v2560_v50  ;;  %v2561_v54 = vadd.f32 %v2489_v51, %v1151_v48  ;;  %4133 = vmatprep.mubr.msk.bf16.mxu0 (!%p3909_p6), %vm672_vm0, %v4509_v18  ;;  %4165 = vmatprep.mubr.msk.bf16.mxu1 (!%p3909_p6), %vm672_vm0, %v4510_v19  ;;  %v2705_v48 = vadd.f32 (!%p3909_p6), %v5374_v40, %v2634_v39  ;;  %v2672_v45 = vld [vmem:[%s4810_s28 + $0x140] sm:$0xff] (!%p3909_p6) }
 0x350   : > { %v2703_v50 = vadd.f32 (!%p3909_p6), %v5374_v40, %v2632_v42  ;;  %v2735_v51 = vadd.f32 (!%p3909_p6), %v5374_v40, %v2664_v43  ;;  %v2674_v43 = vld [vmem:[%s4810_s28 + $0x150] sm:$0xff] (!%p3909_p6) }
 0x351   : > { %2625 = vst [vmem:[%s4810_s28 + $0x1e8] sm:$0xff] %v2561_v54  ;;  %v2704_v54 = vadd.f32 (!%p3909_p6), %v5374_v40, %v2633_v46 }
 0x352   : > { %v2204_v55 = vpop.f32.mrb[156].mxu1  ;;  %v2493_v57 = vpop.f32.mrb[156].mxu0 }
 0x353   : > { %v2494_v58 = vadd.f32 %v2493_v57, %v2204_v55  ;;  %v2206_v59 = vpop.f32.mrb[157].mxu1  ;;  %v2495_v60 = vpop.f32.mrb[157].mxu0  ;;  %2631 = sbr.rel (%p3909_p6) target bundleno = 1106 (0x452), region = 60  ;;  %v2736_v55 = vadd.f32 (!%p3909_p6), %v5374_v40, %v2665_v47  ;;  %v2638_v57 = vld [vmem:[%s4810_s28 + $0x30] sm:$0xff] (!%p3909_p6)  ;;  %v2768_v5 = vmax.f32 (!%p3909_p6), %v2704_v54, 0.0 }
 0x354   : > { %v2207_v61 = vpop.f32.mrb[158].mxu1  ;;  %v2496_v63 = vpop.f32.mrb[158].mxu0  ;;  %v2636_v59 = vld [vmem:[%s4810_s28 + $0x20] sm:$0xff] (!%p3909_p6)  ;;  %v5405_v11 = vadd.f32 (!%p3909_p6), %v5374_v40, %v2638_v57  ;;  %v2641_v57 = vld [vmem:[%s4810_s28 + $0x48] sm:$0xff] (!%p3909_p6) }
 0x355   : > { %v2562_v0 = vadd.f32 %v2494_v58, %v1152_v56  ;;  %v2497_v1 = vadd.f32 %v2496_v63, %v2207_v61  ;;  %v2209_v2 = vpop.f32.mrb[159].mxu1  ;;  %v2498_v3 = vpop.f32.mrb[159].mxu0  ;;  %v5394_v56 = vld [vmem:[%s5823_s15] ss:$0 sm:$0xff] (!%p3909_p6)  ;;  %v2670_v58 = vld [vmem:[%s4810_s28 + $0x130] sm:$0xff] (!%p3909_p6)  ;;  %v2769_v61 = vmax.f32 (!%p3909_p6), %v2705_v48, 0.0  ;;  %v5411_v13 = vadd.f32 (!%p3909_p6), %v5374_v40, %v2636_v59 }
 0x356   : > { %4134 = vmatmul.mubr.msk.bf16.gmra.mrb[12].mxu0 (!%p3909_p6), %vm672_vm0, %v4511_v20  ;;  %4166 = vmatmul.mubr.msk.bf16.gmra.mrb[12].mxu1 (!%p3909_p6), %vm672_vm0, %v4512_v21  ;;  %v2668_v60 = vld [vmem:[%s4810_s28 + $0x120] sm:$0xff] (!%p3909_p6)  ;;  %v2767_v63 = vmax.f32 (!%p3909_p6), %v2703_v50, 0.0  ;;  %v2671_v2 = vld [vmem:[%s4810_s28 + $0x138] sm:$0xff] (!%p3909_p6)  ;;  %v2770_v3 = vmax.f32 (!%p3909_p6), %v2706_v52, 0.0  ;;  %v2800_v6 = vmax.f32 (!%p3909_p6), %v2736_v55, 0.0  ;;  %v5408_v12 = vadd.f32 (!%p3909_p6), %v5374_v40, %v2670_v58  ;;  %v2673_v58 = vld [vmem:[%s4810_s28 + $0x148] sm:$0xff] (!%p3909_p6) }
 0x357   : > { %2626 = vst [vmem:[%s4810_s28 + $0x1f0] sm:$0xff] %v2562_v0  ;;  %v2563_v4 = vadd.f32 %v2497_v1, %v1153_v62  ;;  %4137 = vmatprep.mubr.msk.bf16.mxu0 (!%p3909_p6), %vm672_vm0, %v4513_v22  ;;  %4169 = vmatprep.mubr.msk.bf16.mxu1 (!%p3909_p6), %vm672_vm0, %v4514_v23  ;;  %v2801_v62 = vmax.f32 (!%p3909_p6), %v2737_v49, 0.0  ;;  %v2799_v0 = vmax.f32 (!%p3909_p6), %v2735_v51, 0.0  ;;  %v2639_v1 = vld [vmem:[%s4810_s28 + $0x38] sm:$0xff] (!%p3909_p6)  ;;  %v5414_v35 = vadd.f32 (!%p3909_p6), %v5374_v40, %v2668_v60 }
 0x358   : > { %v5419_v18 = vadd.f32 (!%p3909_p6), %v5374_v40, %v2639_v1  ;;  %v5422_v19 = vadd.f32 (!%p3909_p6), %v5374_v40, %v2671_v2  ;;  %v2773_v41 = vmax.f32 (!%p3909_p6), %v5405_v11, 0.0  ;;  %v2805_v42 = vmax.f32 (!%p3909_p6), %v5408_v12, 0.0  ;;  %v2643_v50 = vld [vmem:[%s4810_s28 + $0x58] sm:$0xff] (!%p3909_p6) }
 0x359   : > { %2627 = vst [vmem:[%s4810_s28 + $0x1f8] sm:$0xff] %v2563_v4  ;;  %v2802_v4 = vmax.f32 (!%p3909_p6), %v2738_v53, 0.0  ;;  %v2771_v48 = vmax.f32 (!%p3909_p6), %v5411_v13, 0.0  ;;  %v2803_v49 = vmax.f32 (!%p3909_p6), %v5414_v35, 0.0  ;;  %v2675_v51 = vld [vmem:[%s4810_s28 + $0x158] sm:$0xff] (!%p3909_p6)  ;;  %v5483_v11 = vadd.f32 (!%p3909_p6), %v5374_v40, %v2641_v57 }
 0x35a   : > { %v2774_v52 = vmax.f32 %v5419_v18, 0.0  ;;  %v2806_v53 = vmax.f32 %v5422_v19, 0.0  ;;  %v5486_v12 = vadd.f32 %v5374_v40, %v2673_v58 }
 0x35e   : > { %4138 = vmatmul.mubr.msk.bf16.gmra.mrb[16].mxu0 %vm672_vm0, %v4515_v24  ;;  %4170 = vmatmul.mubr.msk.bf16.gmra.mrb[16].mxu1 %vm672_vm0, %v4516_v25  ;;  %v5427_v24 = vadd.f32 %v5374_v40, %v2637_v7  ;;  %v5430_v25 = vadd.f32 %v5374_v40, %v2669_v8 }
 0x35f   : > { %4141 = vmatprep.mubr.msk.bf16.mxu0 %vm672_vm0, %v4517_v26  ;;  %4173 = vmatprep.mubr.msk.bf16.mxu1 %vm672_vm0, %v4518_v27 }
 0x360   : > { %v2772_v54 = vmax.f32 %v5427_v24, 0.0  ;;  %v2804_v55 = vmax.f32 %v5430_v25, 0.0 }
 0x366   : > { %4142 = vmatmul.mubr.msk.bf16.gmra.mrb[20].mxu0 %vm672_vm0, %v4519_v28  ;;  %4174 = vmatmul.mubr.msk.bf16.gmra.mrb[20].mxu1 %vm672_vm0, %v4520_v29 }
 0x367   : > { %4145 = vmatprep.mubr.msk.bf16.mxu0 %vm672_vm0, %v4521_v30  ;;  %4177 = vmatprep.mubr.msk.bf16.mxu1 %vm672_vm0, %v4522_v31 }
 0x36e   : > { %4146 = vmatmul.mubr.msk.bf16.gmra.mrb[24].mxu0 %vm672_vm0, %v4523_v32  ;;  %4178 = vmatmul.mubr.msk.bf16.gmra.mrb[24].mxu1 %vm672_vm0, %v4524_v33 }
 0x36f   : > { %4149 = vmatprep.mubr.msk.bf16.mxu0 %vm672_vm0, %v4525_v34  ;;  %4181 = vmatprep.mubr.msk.bf16.mxu1 %vm672_vm0, %v4526_v36 }
 0x376   : > { %4150 = vmatmul.mubr.msk.bf16.gmra.mrb[28].mxu0 %vm672_vm0, %v4527_v37  ;;  %4182 = vmatmul.mubr.msk.bf16.gmra.mrb[28].mxu1 %vm672_vm0, %v4528_v38  ;;  %v2642_v37 = vld [vmem:[%s4810_s28 + $0x50] sm:$0xff] }
 0x411   : > { %v4123_v9 = vpop.f32.mrb[0].mxu0  ;;  %v4155_v10 = vpop.f32.mrb[0].mxu1 }
 0x412   : > { %v3217_v14 = vadd.f32 %v4123_v9, %v5394_v56  ;;  %v3345_v15 = vadd.f32 %v4155_v10, %v5394_v56  ;;  %v3208_v16 = vpop.f32.mrb[1].mxu0  ;;  %v3336_v17 = vpop.f32.mrb[1].mxu1 }
 0x413   : > { %v3209_v20 = vadd.f32 %v5394_v56, %v3208_v16  ;;  %v3337_v21 = vadd.f32 %v5394_v56, %v3336_v17  ;;  %v4124_v22 = vpop.f32.mrb[2].mxu0  ;;  %v4156_v23 = vpop.f32.mrb[2].mxu1 }
 0x414   : > { %v3465_v26 = vadd.f32 %v3217_v14, %v2769_v61  ;;  %v3497_v27 = vadd.f32 %v3345_v15, %v2801_v62  ;;  %v3220_v28 = vadd.f32 %v4124_v22, %v5394_v56  ;;  %v3348_v29 = vadd.f32 %v4156_v23, %v5394_v56  ;;  %v3211_v30 = vpop.f32.mrb[3].mxu0  ;;  %v3339_v31 = vpop.f32.mrb[3].mxu1  ;;  %v2646_v22 = vld [vmem:[%s4810_s28 + $0x70] sm:$0xff] }
 0x415   : > { %v3463_v32 = vadd.f32 %v3209_v20, %v2767_v63  ;;  %v3495_v33 = vadd.f32 %v3337_v21, %v2799_v0  ;;  %v3212_v34 = vadd.f32 %v5394_v56, %v3211_v30  ;;  %v3340_v36 = vadd.f32 %v5394_v56, %v3339_v31 }
 0x416   : > { %3529 = vst [vmem:[%s4810_s28 + $0x10] sm:$0xff] %v3465_v26  ;;  %3561 = vst [vmem:[%s4810_s28 + $0x110] sm:$0xff] %v3497_v27  ;;  %v3466_v38 = vadd.f32 %v3220_v28, %v2770_v3  ;;  %v3498_v39 = vadd.f32 %v3348_v29, %v2802_v4  ;;  %v5461_v61 = vadd.f32 %v5374_v40, %v2642_v37  ;;  %v2678_v27 = vld [vmem:[%s4810_s28 + $0x170] sm:$0xff]  ;;  %v2644_v28 = vld [vmem:[%s4810_s28 + $0x60] sm:$0xff] }
 0x417   : > { %3527 = vst [vmem:[%s4810_s28] sm:$0xff] %v3463_v32  ;;  %3559 = vst [vmem:[%s4810_s28 + $0x100] sm:$0xff] %v3495_v33  ;;  %v3464_v46 = vadd.f32 %v3212_v34, %v2768_v5  ;;  %v3496_v47 = vadd.f32 %v3340_v36, %v2800_v6  ;;  %v5464_v62 = vadd.f32 %v5374_v40, %v2674_v43  ;;  %v2676_v29 = vld [vmem:[%s4810_s28 + $0x160] sm:$0xff]  ;;  %v2647_v34 = vld [vmem:[%s4810_s28 + $0x78] sm:$0xff] }
 0x418   : > { %3530 = vst [vmem:[%s4810_s28 + $0x18] sm:$0xff] %v3466_v38  ;;  %3562 = vst [vmem:[%s4810_s28 + $0x118] sm:$0xff] %v3498_v39  ;;  %v5467_v63 = vadd.f32 %v5374_v40, %v2640_v44  ;;  %v5470_v0 = vadd.f32 %v5374_v40, %v2672_v45  ;;  %v5475_v5 = vadd.f32 %v5374_v40, %v2643_v50  ;;  %v2777_v25 = vmax.f32 %v5461_v61, 0.0  ;;  %v2679_v36 = vld [vmem:[%s4810_s28 + $0x178] sm:$0xff]  ;;  %v2677_v43 = vld [vmem:[%s4810_s28 + $0x168] sm:$0xff] }
 0x419   : > { %3528 = vst [vmem:[%s4810_s28 + $0x8] sm:$0xff] %v3464_v46  ;;  %3560 = vst [vmem:[%s4810_s28 + $0x108] sm:$0xff] %v3496_v47  ;;  %v4127_v59 = vpop.f32.mrb[4].mxu0  ;;  %v4159_v60 = vpop.f32.mrb[4].mxu1  ;;  %v5478_v6 = vadd.f32 %v5374_v40, %v2675_v51  ;;  %v2809_v26 = vmax.f32 %v5464_v62, 0.0  ;;  %v2776_v39 = vmax.f32 %v5483_v11, 0.0  ;;  %v5517_v46 = vadd.f32 %v5374_v40, %v2646_v22 }
 0x41a   : > { %v3233_v1 = vadd.f32 %v4127_v59, %v5394_v56  ;;  %v3361_v2 = vadd.f32 %v4159_v60, %v5394_v56  ;;  %v3224_v3 = vpop.f32.mrb[5].mxu0  ;;  %v3352_v4 = vpop.f32.mrb[5].mxu1  ;;  %v2775_v32 = vmax.f32 %v5467_v63, 0.0  ;;  %v2807_v33 = vmax.f32 %v5470_v0, 0.0 }
 0x41b   : > { %v3225_v7 = vadd.f32 %v5394_v56, %v3224_v3  ;;  %v3353_v8 = vadd.f32 %v5394_v56, %v3352_v4  ;;  %v4128_v9 = vpop.f32.mrb[6].mxu0  ;;  %v4160_v10 = vpop.f32.mrb[6].mxu1  ;;  %v2778_v37 = vmax.f32 %v5475_v5, 0.0  ;;  %v2810_v38 = vmax.f32 %v5478_v6, 0.0 }
 0x41c   : > { %v3469_v13 = vadd.f32 %v3233_v1, %v2773_v41  ;;  %v3501_v35 = vadd.f32 %v3361_v2, %v2805_v42  ;;  %v3236_v14 = vadd.f32 %v4128_v9, %v5394_v56  ;;  %v3364_v15 = vadd.f32 %v4160_v10, %v5394_v56  ;;  %v3227_v16 = vpop.f32.mrb[7].mxu0  ;;  %v3355_v17 = vpop.f32.mrb[7].mxu1  ;;  %v2645_v42 = vld [vmem:[%s4810_s28 + $0x68] sm:$0xff]  ;;  %v2650_v9 = vld [vmem:[%s4810_s28 + $0x90] sm:$0xff] }
 0x41d   : > { %v3467_v18 = vadd.f32 %v3225_v7, %v2771_v48  ;;  %v3499_v19 = vadd.f32 %v3353_v8, %v2803_v49  ;;  %v3228_v20 = vadd.f32 %v5394_v56, %v3227_v16  ;;  %v3356_v21 = vadd.f32 %v5394_v56, %v3355_v17 }
 0x41e   : > { %3533 = vst [vmem:[%s4810_s28 + $0x30] sm:$0xff] %v3469_v13  ;;  %3565 = vst [vmem:[%s4810_s28 + $0x130] sm:$0xff] %v3501_v35  ;;  %v3470_v23 = vadd.f32 %v3236_v14, %v2774_v52  ;;  %v3502_v24 = vadd.f32 %v3364_v15, %v2806_v53  ;;  %v2808_v41 = vmax.f32 %v5486_v12, 0.0  ;;  %v5520_v47 = vadd.f32 %v5374_v40, %v2678_v27  ;;  %v2682_v35 = vld [vmem:[%s4810_s28 + $0x190] sm:$0xff]  ;;  %v2648_v14 = vld [vmem:[%s4810_s28 + $0x80] sm:$0xff] }
 0x41f   : > { %3531 = vst [vmem:[%s4810_s28 + $0x20] sm:$0xff] %v3467_v18  ;;  %3563 = vst [vmem:[%s4810_s28 + $0x120] sm:$0xff] %v3499_v19  ;;  %v3468_v30 = vadd.f32 %v3228_v20, %v2772_v54  ;;  %v3500_v31 = vadd.f32 %v3356_v21, %v2804_v55  ;;  %v5523_v48 = vadd.f32 %v5374_v40, %v2644_v28  ;;  %v2781_v12 = vmax.f32 %v5517_v46, 0.0  ;;  %v2680_v15 = vld [vmem:[%s4810_s28 + $0x180] sm:$0xff]  ;;  %v2651_v20 = vld [vmem:[%s4810_s28 + $0x98] sm:$0xff] }
 0x420   : > { %3534 = vst [vmem:[%s4810_s28 + $0x38] sm:$0xff] %v3470_v23  ;;  %3566 = vst [vmem:[%s4810_s28 + $0x138] sm:$0xff] %v3502_v24  ;;  %v5526_v49 = vadd.f32 %v5374_v40, %v2676_v29  ;;  %v5531_v54 = vadd.f32 %v5374_v40, %v2647_v34  ;;  %v5534_v55 = vadd.f32 %v5374_v40, %v2679_v36  ;;  %v2813_v13 = vmax.f32 %v5520_v47, 0.0  ;;  %v2683_v21 = vld [vmem:[%s4810_s28 + $0x198] sm:$0xff]  ;;  %v2681_v27 = vld [vmem:[%s4810_s28 + $0x188] sm:$0xff] }
 0x421   : > { %3532 = vst [vmem:[%s4810_s28 + $0x28] sm:$0xff] %v3468_v30  ;;  %3564 = vst [vmem:[%s4810_s28 + $0x128] sm:$0xff] %v3500_v31  ;;  %v4131_v44 = vpop.f32.mrb[8].mxu0  ;;  %v4163_v45 = vpop.f32.mrb[8].mxu1  ;;  %v5539_v61 = vadd.f32 %v5374_v40, %v2645_v42  ;;  %v5542_v62 = vadd.f32 %v5374_v40, %v2677_v43  ;;  %v2779_v18 = vmax.f32 %v5523_v48, 0.0  ;;  %v5573_v30 = vadd.f32 %v5374_v40, %v2650_v9 }
 0x422   : > { %v3249_v50 = vadd.f32 %v4131_v44, %v5394_v56  ;;  %v3377_v51 = vadd.f32 %v4163_v45, %v5394_v56  ;;  %v3240_v52 = vpop.f32.mrb[9].mxu0  ;;  %v3368_v53 = vpop.f32.mrb[9].mxu1  ;;  %v2811_v19 = vmax.f32 %v5526_v49, 0.0  ;;  %v2782_v22 = vmax.f32 %v5531_v54, 0.0 }
 0x423   : > { %v3241_v57 = vadd.f32 %v5394_v56, %v3240_v52  ;;  %v3369_v58 = vadd.f32 %v5394_v56, %v3368_v53  ;;  %v4132_v59 = vpop.f32.mrb[10].mxu0  ;;  %v4164_v60 = vpop.f32.mrb[10].mxu1  ;;  %v2814_v23 = vmax.f32 %v5534_v55, 0.0  ;;  %v2780_v24 = vmax.f32 %v5539_v61, 0.0 }
 0x424   : > { %v3473_v63 = vadd.f32 %v3249_v50, %v2777_v25  ;;  %v3505_v0 = vadd.f32 %v3377_v51, %v2809_v26  ;;  %v3252_v1 = vadd.f32 %v4132_v59, %v5394_v56  ;;  %v3380_v2 = vadd.f32 %v4164_v60, %v5394_v56  ;;  %v3243_v3 = vpop.f32.mrb[11].mxu0  ;;  %v3371_v4 = vpop.f32.mrb[11].mxu1  ;;  %v2649_v26 = vld [vmem:[%s4810_s28 + $0x88] sm:$0xff]  ;;  %v2654_v59 = vld [vmem:[%s4810_s28 + $0xb0] sm:$0xff] }
 0x425   : > { %v3471_v5 = vadd.f32 %v3241_v57, %v2775_v32  ;;  %v3503_v6 = vadd.f32 %v3369_v58, %v2807_v33  ;;  %v3244_v7 = vadd.f32 %v5394_v56, %v3243_v3  ;;  %v3372_v8 = vadd.f32 %v5394_v56, %v3371_v4 }
 0x426   : > { %3537 = vst [vmem:[%s4810_s28 + $0x50] sm:$0xff] %v3473_v63  ;;  %3569 = vst [vmem:[%s4810_s28 + $0x150] sm:$0xff] %v3505_v0  ;;  %v3474_v10 = vadd.f32 %v3252_v1, %v2778_v37  ;;  %v3506_v11 = vadd.f32 %v3380_v2, %v2810_v38  ;;  %v2812_v25 = vmax.f32 %v5542_v62, 0.0  ;;  %v5576_v31 = vadd.f32 %v5374_v40, %v2682_v35  ;;  %v2686_v0 = vld [vmem:[%s4810_s28 + $0x1b0] sm:$0xff]  ;;  %v2652_v1 = vld [vmem:[%s4810_s28 + $0xa0] sm:$0xff] }
 0x427   : > { %3535 = vst [vmem:[%s4810_s28 + $0x40] sm:$0xff] %v3471_v5  ;;  %3567 = vst [vmem:[%s4810_s28 + $0x140] sm:$0xff] %v3503_v6  ;;  %v3472_v16 = vadd.f32 %v3244_v7, %v2776_v39  ;;  %v3504_v17 = vadd.f32 %v3372_v8, %v2808_v41  ;;  %v5579_v32 = vadd.f32 %v5374_v40, %v2648_v14  ;;  %v2785_v62 = vmax.f32 %v5573_v30, 0.0  ;;  %v2684_v2 = vld [vmem:[%s4810_s28 + $0x1a0] sm:$0xff]  ;;  %v2655_v7 = vld [vmem:[%s4810_s28 + $0xb8] sm:$0xff] }
 0x428   : > { %3538 = vst [vmem:[%s4810_s28 + $0x58] sm:$0xff] %v3474_v10  ;;  %3570 = vst [vmem:[%s4810_s28 + $0x158] sm:$0xff] %v3506_v11  ;;  %v5582_v33 = vadd.f32 %v5374_v40, %v2680_v15  ;;  %v5587_v39 = vadd.f32 %v5374_v40, %v2651_v20  ;;  %v5590_v41 = vadd.f32 %v5374_v40, %v2683_v21  ;;  %v2817_v63 = vmax.f32 %v5576_v31, 0.0  ;;  %v2687_v8 = vld [vmem:[%s4810_s28 + $0x1b8] sm:$0xff]  ;;  %v2685_v35 = vld [vmem:[%s4810_s28 + $0x1a8] sm:$0xff] }
 0x429   : > { %3536 = vst [vmem:[%s4810_s28 + $0x48] sm:$0xff] %v3472_v16  ;;  %3568 = vst [vmem:[%s4810_s28 + $0x148] sm:$0xff] %v3504_v17  ;;  %v4135_v28 = vpop.f32.mrb[12].mxu0  ;;  %v4167_v29 = vpop.f32.mrb[12].mxu1  ;;  %v5595_v46 = vadd.f32 %v5374_v40, %v2649_v26  ;;  %v5598_v47 = vadd.f32 %v5374_v40, %v2681_v27  ;;  %v2783_v5 = vmax.f32 %v5579_v32, 0.0  ;;  %v5629_v16 = vadd.f32 %v5374_v40, %v2654_v59 }
 0x42a   : > { %v3265_v34 = vadd.f32 %v4135_v28, %v5394_v56  ;;  %v3393_v36 = vadd.f32 %v4167_v29, %v5394_v56  ;;  %v3256_v37 = vpop.f32.mrb[13].mxu0  ;;  %v3384_v38 = vpop.f32.mrb[13].mxu1  ;;  %v2815_v6 = vmax.f32 %v5582_v33, 0.0  ;;  %v2786_v9 = vmax.f32 %v5587_v39, 0.0 }
 0x42b   : > { %v3257_v42 = vadd.f32 %v5394_v56, %v3256_v37  ;;  %v3385_v43 = vadd.f32 %v5394_v56, %v3384_v38  ;;  %v4136_v44 = vpop.f32.mrb[14].mxu0  ;;  %v4168_v45 = vpop.f32.mrb[14].mxu1  ;;  %v2818_v10 = vmax.f32 %v5590_v41, 0.0  ;;  %v2784_v11 = vmax.f32 %v5595_v46, 0.0 }
 0x42c   : > { %v3477_v48 = vadd.f32 %v3265_v34, %v2781_v12  ;;  %v3509_v49 = vadd.f32 %v3393_v36, %v2813_v13  ;;  %v3268_v50 = vadd.f32 %v4136_v44, %v5394_v56  ;;  %v3396_v51 = vadd.f32 %v4168_v45, %v5394_v56  ;;  %v3259_v52 = vpop.f32.mrb[15].mxu0  ;;  %v3387_v53 = vpop.f32.mrb[15].mxu1  ;;  %v2653_v13 = vld [vmem:[%s4810_s28 + $0xa8] sm:$0xff]  ;;  %v2658_v44 = vld [vmem:[%s4810_s28 + $0xd0] sm:$0xff] }
 0x42d   : > { %v3475_v54 = vadd.f32 %v3257_v42, %v2779_v18  ;;  %v3507_v55 = vadd.f32 %v3385_v43, %v2811_v19  ;;  %v3260_v57 = vadd.f32 %v5394_v56, %v3259_v52  ;;  %v3388_v58 = vadd.f32 %v5394_v56, %v3387_v53 }
 0x42e   : > { %3541 = vst [vmem:[%s4810_s28 + $0x70] sm:$0xff] %v3477_v48  ;;  %3573 = vst [vmem:[%s4810_s28 + $0x170] sm:$0xff] %v3509_v49  ;;  %v3478_v60 = vadd.f32 %v3268_v50, %v2782_v22  ;;  %v3510_v61 = vadd.f32 %v3396_v51, %v2814_v23  ;;  %v2816_v12 = vmax.f32 %v5598_v47, 0.0  ;;  %v5632_v17 = vadd.f32 %v5374_v40, %v2686_v0  ;;  %v2690_v49 = vld [vmem:[%s4810_s28 + $0x1d0] sm:$0xff]  ;;  %v2656_v50 = vld [vmem:[%s4810_s28 + $0xc0] sm:$0xff] }
 0x42f   : > { %3539 = vst [vmem:[%s4810_s28 + $0x60] sm:$0xff] %v3475_v54  ;;  %3571 = vst [vmem:[%s4810_s28 + $0x160] sm:$0xff] %v3507_v55  ;;  %v3476_v3 = vadd.f32 %v3260_v57, %v2780_v24  ;;  %v3508_v4 = vadd.f32 %v3388_v58, %v2812_v25  ;;  %v5635_v18 = vadd.f32 %v5374_v40, %v2652_v1  ;;  %v2789_v47 = vmax.f32 %v5629_v16, 0.0  ;;  %v2688_v51 = vld [vmem:[%s4810_s28 + $0x1c0] sm:$0xff]  ;;  %v2659_v57 = vld [vmem:[%s4810_s28 + $0xd8] sm:$0xff] }
 0x430   : > { %3542 = vst [vmem:[%s4810_s28 + $0x78] sm:$0xff] %v3478_v60  ;;  %3574 = vst [vmem:[%s4810_s28 + $0x178] sm:$0xff] %v3510_v61  ;;  %v5638_v19 = vadd.f32 %v5374_v40, %v2684_v2  ;;  %v5643_v24 = vadd.f32 %v5374_v40, %v2655_v7  ;;  %v5646_v25 = vadd.f32 %v5374_v40, %v2687_v8  ;;  %v2821_v48 = vmax.f32 %v5632_v17, 0.0  ;;  %v2691_v58 = vld [vmem:[%s4810_s28 + $0x1d8] sm:$0xff]  ;;  %v2689_v0 = vld [vmem:[%s4810_s28 + $0x1c8] sm:$0xff] }
 0x431   : > { %3540 = vst [vmem:[%s4810_s28 + $0x68] sm:$0xff] %v3476_v3  ;;  %3572 = vst [vmem:[%s4810_s28 + $0x168] sm:$0xff] %v3508_v4  ;;  %v4139_v14 = vpop.f32.mrb[16].mxu0  ;;  %v4171_v15 = vpop.f32.mrb[16].mxu1  ;;  %v5651_v30 = vadd.f32 %v5374_v40, %v2653_v13  ;;  %v5654_v31 = vadd.f32 %v5374_v40, %v2685_v35  ;;  %v2787_v54 = vmax.f32 %v5635_v18, 0.0  ;;  %v5685_v3 = vadd.f32 %v5374_v40, %v2658_v44 }
 0x432   : > { %v3281_v20 = vadd.f32 %v4139_v14, %v5394_v56  ;;  %v3409_v21 = vadd.f32 %v4171_v15, %v5394_v56  ;;  %v3272_v22 = vpop.f32.mrb[17].mxu0  ;;  %v3400_v23 = vpop.f32.mrb[17].mxu1  ;;  %v2819_v55 = vmax.f32 %v5638_v19, 0.0  ;;  %v2790_v59 = vmax.f32 %v5643_v24, 0.0 }
 0x433   : > { %v3273_v26 = vadd.f32 %v5394_v56, %v3272_v22  ;;  %v3401_v27 = vadd.f32 %v5394_v56, %v3400_v23  ;;  %v4140_v28 = vpop.f32.mrb[18].mxu0  ;;  %v4172_v29 = vpop.f32.mrb[18].mxu1  ;;  %v2822_v60 = vmax.f32 %v5646_v25, 0.0  ;;  %v2788_v61 = vmax.f32 %v5651_v30, 0.0 }
 0x434   : > { %v3481_v32 = vadd.f32 %v3281_v20, %v2785_v62  ;;  %v3513_v33 = vadd.f32 %v3409_v21, %v2817_v63  ;;  %v3284_v34 = vadd.f32 %v4140_v28, %v5394_v56  ;;  %v3412_v36 = vadd.f32 %v4172_v29, %v5394_v56  ;;  %v3275_v37 = vpop.f32.mrb[19].mxu0  ;;  %v3403_v38 = vpop.f32.mrb[19].mxu1  ;;  %v2657_v63 = vld [vmem:[%s4810_s28 + $0xc8] sm:$0xff] }
 0x435   : > { %v3479_v39 = vadd.f32 %v3273_v26, %v2783_v5  ;;  %v3511_v41 = vadd.f32 %v3401_v27, %v2815_v6  ;;  %v3276_v42 = vadd.f32 %v5394_v56, %v3275_v37  ;;  %v3404_v43 = vadd.f32 %v5394_v56, %v3403_v38 }
 0x436   : > { %3545 = vst [vmem:[%s4810_s28 + $0x90] sm:$0xff] %v3481_v32  ;;  %3577 = vst [vmem:[%s4810_s28 + $0x190] sm:$0xff] %v3513_v33  ;;  %v3482_v45 = vadd.f32 %v3284_v34, %v2786_v9  ;;  %v3514_v46 = vadd.f32 %v3412_v36, %v2818_v10  ;;  %v2820_v62 = vmax.f32 %v5654_v31, 0.0  ;;  %v5688_v4 = vadd.f32 %v5374_v40, %v2690_v49  ;;  %v2662_v32 = vld [vmem:[%s4810_s28 + $0xf0] sm:$0xff] }
 0x437   : > { %3543 = vst [vmem:[%s4810_s28 + $0x80] sm:$0xff] %v3479_v39  ;;  %3575 = vst [vmem:[%s4810_s28 + $0x180] sm:$0xff] %v3511_v41  ;;  %v3480_v52 = vadd.f32 %v3276_v42, %v2784_v11  ;;  %v3512_v53 = vadd.f32 %v3404_v43, %v2816_v12  ;;  %v5691_v5 = vadd.f32 %v5374_v40, %v2656_v50  ;;  %v2694_v33 = vld [vmem:[%s4810_s28 + $0x1f0] sm:$0xff]  ;;  %v2793_v34 = vmax.f32 %v5685_v3, 0.0  ;;  %v2660_v39 = vld [vmem:[%s4810_s28 + $0xe0] sm:$0xff] }
 0x438   : > { %3546 = vst [vmem:[%s4810_s28 + $0x98] sm:$0xff] %v3482_v45  ;;  %3578 = vst [vmem:[%s4810_s28 + $0x198] sm:$0xff] %v3514_v46  ;;  %v5694_v6 = vadd.f32 %v5374_v40, %v2688_v51  ;;  %v5699_v11 = vadd.f32 %v5374_v40, %v2659_v57  ;;  %v5702_v12 = vadd.f32 %v5374_v40, %v2691_v58  ;;  %v2825_v36 = vmax.f32 %v5688_v4, 0.0  ;;  %v2692_v41 = vld [vmem:[%s4810_s28 + $0x1e0] sm:$0xff] }
 0x439   : > { %3544 = vst [vmem:[%s4810_s28 + $0x88] sm:$0xff] %v3480_v52  ;;  %3576 = vst [vmem:[%s4810_s28 + $0x188] sm:$0xff] %v3512_v53  ;;  %v4143_v1 = vpop.f32.mrb[20].mxu0  ;;  %v4175_v2 = vpop.f32.mrb[20].mxu1  ;;  %v5707_v16 = vadd.f32 %v5374_v40, %v2657_v63  ;;  %v5710_v17 = vadd.f32 %v5374_v40, %v2689_v0  ;;  %v2791_v37 = vmax.f32 %v5691_v5, 0.0  ;;  %v2733_v52 = vadd.f32 %v5374_v40, %v2662_v32  ;;  %v2661_v5 = vld [vmem:[%s4810_s28 + $0xe8] sm:$0xff] }
 0x43a   : > { %v3297_v7 = vadd.f32 %v4143_v1, %v5394_v56  ;;  %v3425_v8 = vadd.f32 %v4175_v2, %v5394_v56  ;;  %v3288_v9 = vpop.f32.mrb[21].mxu0  ;;  %v3416_v10 = vpop.f32.mrb[21].mxu1  ;;  %v2823_v38 = vmax.f32 %v5694_v6, 0.0  ;;  %v2794_v44 = vmax.f32 %v5699_v11, 0.0  ;;  %v2693_v6 = vld [vmem:[%s4810_s28 + $0x1e8] sm:$0xff] }
 0x43b   : > { %v3289_v13 = vadd.f32 %v5394_v56, %v3288_v9  ;;  %v3417_v35 = vadd.f32 %v5394_v56, %v3416_v10  ;;  %v4144_v14 = vpop.f32.mrb[22].mxu0  ;;  %v4176_v15 = vpop.f32.mrb[22].mxu1  ;;  %v2826_v45 = vmax.f32 %v5702_v12, 0.0  ;;  %v2792_v46 = vmax.f32 %v5707_v16, 0.0 }
 0x43c   : > { %v3485_v18 = vadd.f32 %v3297_v7, %v2789_v47  ;;  %v3517_v19 = vadd.f32 %v3425_v8, %v2821_v48  ;;  %v3300_v20 = vadd.f32 %v4144_v14, %v5394_v56  ;;  %v3428_v21 = vadd.f32 %v4176_v15, %v5394_v56  ;;  %v3291_v22 = vpop.f32.mrb[23].mxu0  ;;  %v3419_v23 = vpop.f32.mrb[23].mxu1 }
 0x43d   : > { %v3483_v24 = vadd.f32 %v3289_v13, %v2787_v54  ;;  %v3515_v25 = vadd.f32 %v3417_v35, %v2819_v55  ;;  %v3292_v26 = vadd.f32 %v5394_v56, %v3291_v22  ;;  %v3420_v27 = vadd.f32 %v5394_v56, %v3419_v23 }
 0x43e   : > { %3549 = vst [vmem:[%s4810_s28 + $0xb0] sm:$0xff] %v3485_v18  ;;  %3581 = vst [vmem:[%s4810_s28 + $0x1b0] sm:$0xff] %v3517_v19  ;;  %v3486_v28 = vadd.f32 %v3300_v20, %v2790_v59  ;;  %v3518_v29 = vadd.f32 %v3428_v21, %v2822_v60  ;;  %v2824_v47 = vmax.f32 %v5710_v17, 0.0  ;;  %v2765_v53 = vadd.f32 %v5374_v40, %v2694_v33 }
 0x43f   : > { %3547 = vst [vmem:[%s4810_s28 + $0xa0] sm:$0xff] %v3483_v24  ;;  %3579 = vst [vmem:[%s4810_s28 + $0x1a0] sm:$0xff] %v3515_v25  ;;  %v3484_v30 = vadd.f32 %v3292_v26, %v2788_v61  ;;  %v3516_v31 = vadd.f32 %v3420_v27, %v2820_v62  ;;  %v2731_v59 = vadd.f32 %v5374_v40, %v2660_v39  ;;  %v2663_v61 = vld [vmem:[%s4810_s28 + $0xf8] sm:$0xff]  ;;  %v2797_v18 = vmax.f32 %v2733_v52, 0.0 }
 0x440   : > { %3550 = vst [vmem:[%s4810_s28 + $0xb8] sm:$0xff] %v3486_v28  ;;  %3582 = vst [vmem:[%s4810_s28 + $0x1b8] sm:$0xff] %v3518_v29  ;;  %v2763_v60 = vadd.f32 %v5374_v40, %v2692_v41  ;;  %v2695_v62 = vld [vmem:[%s4810_s28 + $0x1f8] sm:$0xff]  ;;  %v2734_v13 = vadd.f32 %v5374_v40, %v2663_v61  ;;  %v2732_v16 = vadd.f32 %v5374_v40, %v2661_v5  ;;  %v2829_v19 = vmax.f32 %v2765_v53, 0.0 }
 0x441   : > { %3548 = vst [vmem:[%s4810_s28 + $0xa8] sm:$0xff] %v3484_v30  ;;  %3580 = vst [vmem:[%s4810_s28 + $0x1a8] sm:$0xff] %v3516_v31  ;;  %v4147_v42 = vpop.f32.mrb[24].mxu0  ;;  %v4179_v43 = vpop.f32.mrb[24].mxu1  ;;  %v2766_v35 = vadd.f32 %v5374_v40, %v2695_v62  ;;  %v2764_v17 = vadd.f32 %v5374_v40, %v2693_v6  ;;  %v2795_v22 = vmax.f32 %v2731_v59, 0.0 }
 0x442   : > { %v3313_v48 = vadd.f32 %v4147_v42, %v5394_v56  ;;  %v3441_v49 = vadd.f32 %v4179_v43, %v5394_v56  ;;  %v3304_v50 = vpop.f32.mrb[25].mxu0  ;;  %v3432_v51 = vpop.f32.mrb[25].mxu1  ;;  %v2827_v23 = vmax.f32 %v2763_v60, 0.0  ;;  %v2798_v28 = vmax.f32 %v2734_v13, 0.0 }
 0x443   : > { %v3305_v54 = vadd.f32 %v5394_v56, %v3304_v50  ;;  %v3433_v55 = vadd.f32 %v5394_v56, %v3432_v51  ;;  %v4148_v57 = vpop.f32.mrb[26].mxu0  ;;  %v4180_v58 = vpop.f32.mrb[26].mxu1  ;;  %v2830_v29 = vmax.f32 %v2766_v35, 0.0  ;;  %v2796_v33 = vmax.f32 %v2732_v16, 0.0 }
 0x444   : > { %v3489_v63 = vadd.f32 %v3313_v48, %v2793_v34  ;;  %v3521_v0 = vadd.f32 %v3441_v49, %v2825_v36  ;;  %v3316_v1 = vadd.f32 %v4148_v57, %v5394_v56  ;;  %v3444_v2 = vadd.f32 %v4180_v58, %v5394_v56  ;;  %v3307_v3 = vpop.f32.mrb[27].mxu0  ;;  %v3435_v4 = vpop.f32.mrb[27].mxu1 }
 0x445   : > { %v3487_v7 = vadd.f32 %v3305_v54, %v2791_v37  ;;  %v3519_v8 = vadd.f32 %v3433_v55, %v2823_v38  ;;  %v3308_v9 = vadd.f32 %v5394_v56, %v3307_v3  ;;  %v3436_v10 = vadd.f32 %v5394_v56, %v3435_v4 }
 0x446   : > { %3553 = vst [vmem:[%s4810_s28 + $0xd0] sm:$0xff] %v3489_v63  ;;  %3585 = vst [vmem:[%s4810_s28 + $0x1d0] sm:$0xff] %v3521_v0  ;;  %v3490_v11 = vadd.f32 %v3316_v1, %v2794_v44  ;;  %v3522_v12 = vadd.f32 %v3444_v2, %v2826_v45  ;;  %v2828_v34 = vmax.f32 %v2764_v17, 0.0 }
 0x447   : > { %3551 = vst [vmem:[%s4810_s28 + $0xc0] sm:$0xff] %v3487_v7  ;;  %3583 = vst [vmem:[%s4810_s28 + $0x1c0] sm:$0xff] %v3519_v8  ;;  %v3488_v14 = vadd.f32 %v3308_v9, %v2792_v46  ;;  %v3520_v15 = vadd.f32 %v3436_v10, %v2824_v47 }
 0x448   : > { %3554 = vst [vmem:[%s4810_s28 + $0xd8] sm:$0xff] %v3490_v11  ;;  %3586 = vst [vmem:[%s4810_s28 + $0x1d8] sm:$0xff] %v3522_v12 }
 0x449   : > { %3552 = vst [vmem:[%s4810_s28 + $0xc8] sm:$0xff] %v3488_v14  ;;  %3584 = vst [vmem:[%s4810_s28 + $0x1c8] sm:$0xff] %v3520_v15  ;;  %v4151_v20 = vpop.f32.mrb[28].mxu0  ;;  %v4183_v21 = vpop.f32.mrb[28].mxu1 }
 0x44a   : > { %v3329_v24 = vadd.f32 %v4151_v20, %v5394_v56  ;;  %v3457_v25 = vadd.f32 %v4183_v21, %v5394_v56  ;;  %v3320_v26 = vpop.f32.mrb[29].mxu0  ;;  %v3448_v27 = vpop.f32.mrb[29].mxu1 }
 0x44b   : > { %v3321_v40 = vadd.f32 %v5394_v56, %v3320_v26  ;;  %v3449_v30 = vadd.f32 %v5394_v56, %v3448_v27  ;;  %v4152_v31 = vpop.f32.mrb[30].mxu0  ;;  %v4184_v32 = vpop.f32.mrb[30].mxu1 }
 0x44c   : > { %v3493_v36 = vadd.f32 %v3329_v24, %v2797_v18  ;;  %v3525_v37 = vadd.f32 %v3457_v25, %v2829_v19  ;;  %v3332_v38 = vadd.f32 %v4152_v31, %v5394_v56  ;;  %v3460_v39 = vadd.f32 %v4184_v32, %v5394_v56  ;;  %v3323_v41 = vpop.f32.mrb[31].mxu0  ;;  %v3451_v42 = vpop.f32.mrb[31].mxu1 }
 0x44d   : > { %v3491_v43 = vadd.f32 %v3321_v40, %v2795_v22  ;;  %v3523_v44 = vadd.f32 %v3449_v30, %v2827_v23  ;;  %v3324_v45 = vadd.f32 %v5394_v56, %v3323_v41  ;;  %v3452_v46 = vadd.f32 %v5394_v56, %v3451_v42 }
 0x44e   : > { %3557 = vst [vmem:[%s4810_s28 + $0xf0] sm:$0xff] %v3493_v36  ;;  %3589 = vst [vmem:[%s4810_s28 + $0x1f0] sm:$0xff] %v3525_v37  ;;  %v3494_v47 = vadd.f32 %v3332_v38, %v2798_v28  ;;  %v3526_v48 = vadd.f32 %v3460_v39, %v2830_v29 }
 0x44f   : > { %3555 = vst [vmem:[%s4810_s28 + $0xe0] sm:$0xff] %v3491_v43  ;;  %3587 = vst [vmem:[%s4810_s28 + $0x1e0] sm:$0xff] %v3523_v44  ;;  %v3492_v49 = vadd.f32 %v3324_v45, %v2796_v33  ;;  %v3524_v50 = vadd.f32 %v3452_v46, %v2828_v34 }
 0x450   : > { %3558 = vst [vmem:[%s4810_s28 + $0xf8] sm:$0xff] %v3494_v47  ;;  %3590 = vst [vmem:[%s4810_s28 + $0x1f8] sm:$0xff] %v3526_v48 }
 0x451   : > { %3556 = vst [vmem:[%s4810_s28 + $0xe8] sm:$0xff] %v3492_v49  ;;  %3588 = vst [vmem:[%s4810_s28 + $0x1e8] sm:$0xff] %v3524_v50 }
 0x452 PF: > { %s20_s8 = sadd.s32 1, %s4625_s8   ;;  %s5824_s23 = sld [smem:[#allocation5_spill]] }
 0x453   : > { %p17_p8 = scmp.ge.s32.totalorder %s20_s8, 6   ;;  %s5825_s24 = smov %s4601_s25 }
 0x454   : > { %s5826_s25 = smov %s4605_s26  ;;  %s5827_s26 = smov %s4740_s21 }
 0x455   : > { %s5828_s27 = smov %s4617_s29  ;;  %s5829_s28 = smov %s4621_s30 }
 0x456   : > { %s5831_s30 = smov %s5837_s11  ;;  %19 = sbr.rel (!%p17_p8) target bundleno = 9 (0x9), region = 102 }
 0x458   : > { %s5830_s29 = smov %s5824_s23 }
 0x45d   :  { %3613 = vsyncpa [#allocation3], 1 }
 0x45e   :  { %3615 = vsyncpa [#allocation3 + $0x1], 1 }

</bundles_post_ra>
